<compile_context>
chip_gen: v7x
topology: tpu7x:2x2x1
jax: 0.10.0
libtpu: 0.0.40
codegen_flags: <defaults>
</compile_context>

<pallas_src>
import functools

import jax
import jax.numpy as jnp
from jax import lax
from jax.experimental import pallas as pl
from jax.experimental.pallas import tpu as pltpu


# ----------------------------------------------------------------------------
# Fused Pallas kernel: all LSTM layers + final Linear in one call
# ----------------------------------------------------------------------------
def _stock_lstm_fused_kernel(*refs, num_layers, seq_len, batch_pad, hidden_size):
    """Ref layout (positional):
      refs[0]                      x_flat   (T*Bp, D_in)         [compute dtype]
      refs[1 + 3l .. 3 + 3l]       per layer: w_ih^T (D_l,4H), w_hh^T (H,4H),
                                   bias (1,4H) f32   -- gate cols are [i,f,o,g]
      refs[1 + 3L], refs[2 + 3L]   fc_w^T (H,O), fc_b (1,O)
      refs[3 + 3L]                 out_ref (Bp, O)
      refs[4 + 3L], refs[5 + 3L]   VMEM scratch: gx (T*Bp,4H) f32,
                                   act (T*Bp,H) [compute dtype]
    """
    T, Bp, H = seq_len, batch_pad, hidden_size

    x_ref = refs[0]
    idx = 1
    layer_refs = []
    for _ in range(num_layers):
        layer_refs.append((refs[idx], refs[idx + 1], refs[idx + 2]))
        idx += 3
    fc_w_ref, fc_b_ref = refs[idx], refs[idx + 1]
    out_ref = refs[idx + 2]
    gx_scr, act_scr = refs[idx + 3], refs[idx + 4]

    h_last = None
    for l, (wih_ref, whh_ref, b_ref) in enumerate(layer_refs):
        wih = wih_ref[...]                                     # (D_l, 4H)
        # Full up-front load of the previous layer's activations (WAR on the
        # same scratch ref as this layer's stores) -- keep this explicit.
        inp = x_ref[...] if l == 0 else act_scr[...]           # (T*Bp, D_l)

        # --- Batched input projection for the whole sequence: one MXU matmul.
        gx_scr[...] = (
            jnp.dot(inp.astype(wih.dtype), wih,
                    preferred_element_type=jnp.float32)
            + b_ref[...]
        )                                                      # (T*Bp, 4H) f32

        # Loop-invariant RHS: loaded once per layer so the staged W_hh can be
        # reused across the (capped-)unrolled time steps.
        whh = whh_ref[...]                                     # (H, 4H)
        is_last_layer = (l == num_layers - 1)

        # --- Sequential recurrence: only h @ W_hh^T + gate elementwise.
        def step(t, carry, whh=whh, is_last_layer=is_last_layer):
            h_prev, c_prev = carry
            row = pl.multiple_of(t * Bp, Bp)                   # sublane-aligned
            g = gx_scr[pl.ds(row, Bp), :] + jnp.dot(
                h_prev.astype(whh.dtype), whh,
                preferred_element_type=jnp.float32)            # (Bp, 4H)

            # Gate columns are pre-permuted to [i, f, o, g]:
            #   one sigmoid over 3H lanes + one tanh over H lanes.
            sg = jax.nn.sigmoid(g[:, : 3 * H])
            i_g = sg[:, 0 * H:1 * H]
            f_g = sg[:, 1 * H:2 * H]
            o_g = sg[:, 2 * H:3 * H]
            g_g = jnp.tanh(g[:, 3 * H:4 * H])

            c_new = f_g * c_prev + i_g * g_g
            h_new = o_g * jnp.tanh(c_new)
            if not is_last_layer:
                # Only needed as the next layer's input; last layer keeps h in carry.
                act_scr[pl.ds(row, Bp), :] = h_new.astype(act_scr.dtype)
            return (h_new, c_new)

        h0 = jnp.zeros((Bp, H), jnp.float32)
        c0 = jnp.zeros((Bp, H), jnp.float32)
        # Capped unroll: full unroll at toy T, bounded code growth at real T.
        h_last, _ = lax.fori_loop(0, T, step, (h0, c0), unroll=min(T, 8))

    # --- Final Linear on the last time step's hidden state (fused, no launch).
    fc_w = fc_w_ref[...]
    out_ref[...] = (
        jnp.dot(h_last.astype(fc_w.dtype), fc_w,
                preferred_element_type=jnp.float32)
        + fc_b_ref[...]
    ).astype(out_ref.dtype)


# ----------------------------------------------------------------------------
# Wrapper
# ----------------------------------------------------------------------------
def _ifog_perm(hidden_size):
    """Column permutation PyTorch (i,f,g,o) -> kernel (i,f,o,g)."""
    H = hidden_size
    return jnp.concatenate([
        jnp.arange(0 * H, 1 * H),   # i
        jnp.arange(1 * H, 2 * H),   # f
        jnp.arange(3 * H, 4 * H),   # o
        jnp.arange(2 * H, 3 * H),   # g
    ])


def stock_lstm_forward(x, params, hidden_size, compute_dtype=jnp.float32):
    """Forward pass matching StockLSTM.forward.

    x: (B, T, input_size) float32  (batch_first, same as the PyTorch module)
    compute_dtype: dtype for weights / matmul inputs (f32 or bf16); the h/c
                   carry and gate accumulation stay f32.
    returns: (B, output_size) float32
    """
    B, T, D_in = x.shape
    H = hidden_size
    O = params["fc_w"].shape[0]
    num_layers = len(params["lstm"])
    Bp = ((B + 7) // 8) * 8            # pad batch to a full sublane tile
    perm = _ifog_perm(H)

    # time-major, batch-padded, flattened: (T*Bp, D_in) slab for one batched matmul.
    x_tb = jnp.transpose(x, (1, 0, 2))                     # (T, B, D)
    x_tb = jnp.pad(x_tb, ((0, 0), (0, Bp - B), (0, 0)))    # (T, Bp, D)
    x_flat = x_tb.reshape(T * Bp, D_in).astype(compute_dtype)

    inputs = [x_flat]
    in_specs = [pl.BlockSpec((T * Bp, D_in), lambda i: (0, 0))]
    for l, (w_ih, w_hh, bias) in enumerate(params["lstm"]):
        d_l = D_in if l == 0 else H
        # Gate reorder (i,f,g,o)->(i,f,o,g) + pre-transpose ONCE in XLA;
        # kernel sees MXU-natural [K-last] layout.
        inputs += [
            w_ih[perm].T.astype(compute_dtype),            # (D_l, 4H)
            w_hh[perm].T.astype(compute_dtype),            # (H,   4H)
            bias[:, perm],                                 # (1,   4H) f32
        ]
        in_specs += [
            pl.BlockSpec((d_l, 4 * H), lambda i: (0, 0)),
            pl.BlockSpec((H, 4 * H), lambda i: (0, 0)),
            pl.BlockSpec((1, 4 * H), lambda i: (0, 0)),
        ]
    inputs += [params["fc_w"].T.astype(compute_dtype), params["fc_b"]]
    in_specs += [
        pl.BlockSpec((H, O), lambda i: (0, 0)),
        pl.BlockSpec((1, O), lambda i: (0, 0)),
    ]

    kernel = functools.partial(
        _stock_lstm_fused_kernel,
        num_layers=num_layers, seq_len=T, batch_pad=Bp, hidden_size=H)

    out_p = pl.pallas_call(
        kernel,
        out_shape=jax.ShapeDtypeStruct((Bp, O), jnp.float32),
        grid_spec=pltpu.PrefetchScalarGridSpec(
            num_scalar_prefetch=0,
            grid=(1,),
            in_specs=in_specs,
            out_specs=pl.BlockSpec((Bp, O), lambda i: (0, 0)),
            scratch_shapes=[
                pltpu.VMEM((T * Bp, 4 * H), jnp.float32),   # per-layer x-projection
                pltpu.VMEM((T * Bp, H), compute_dtype),     # inter-layer activations
            ],
        ),
        compiler_params=pltpu.CompilerParams(
            dimension_semantics=("arbitrary",),
        ),
    )(*inputs)
    return out_p[:B]


# ----------------------------------------------------------------------------
# Deterministic parameter initialization (shapes from nn.LSTM / nn.Linear)
# ----------------------------------------------------------------------------
def init_params(key, input_size, hidden_size, num_layers, output_size):
    H = hidden_size
    bound = 1.0 / jnp.sqrt(H)
    params = {"lstm": []}
    for layer in range(num_layers):
        d_in = input_size if layer == 0 else H
        key, k1, k2, k3, k4 = jax.random.split(key, 5)
        w_ih = jax.random.uniform(k1, (4 * H, d_in), jnp.float32, -bound, bound)
        w_hh = jax.random.uniform(k2, (4 * H, H), jnp.float32, -bound, bound)
        b_ih = jax.random.uniform(k3, (4 * H,), jnp.float32, -bound, bound)
        b_hh = jax.random.uniform(k4, (4 * H,), jnp.float32, -bound, bound)
        bias = (b_ih + b_hh).reshape(1, 4 * H)   # fold the two biases
        params["lstm"].append((w_ih, w_hh, bias))
    key, k5, k6 = jax.random.split(key, 3)
    fc_bound = 1.0 / jnp.sqrt(H)
    params["fc_w"] = jax.random.uniform(k5, (output_size, H), jnp.float32,
                                        -fc_bound, fc_bound)
    params["fc_b"] = jax.random.uniform(k6, (1, output_size), jnp.float32,
                                        -fc_bound, fc_bound).astype(jnp.float32)
    return params


# ----------------------------------------------------------------------------
# Pure-JAX reference (for correctness check only) — PyTorch gate order (i,f,g,o)
# ----------------------------------------------------------------------------
def reference_forward(x, params, hidden_size):
    H = hidden_size
    xs = jnp.transpose(x, (1, 0, 2))          # (T, B, D)
    for (w_ih, w_hh, bias) in params["lstm"]:
        B = xs.shape[1]
        h0 = jnp.zeros((B, H), jnp.float32)
        c0 = jnp.zeros((B, H), jnp.float32)

        def step(carry, x_t, w_ih=w_ih, w_hh=w_hh, bias=bias):
            h, c = carry
            g = x_t @ w_ih.T + h @ w_hh.T + bias[0]
            i = jax.nn.sigmoid(g[:, 0 * H:1 * H])
            f = jax.nn.sigmoid(g[:, 1 * H:2 * H])
            gg = jnp.tanh(g[:, 2 * H:3 * H])
            o = jax.nn.sigmoid(g[:, 3 * H:4 * H])
            c_new = f * c + i * gg
            h_new = o * jnp.tanh(c_new)
            return (h_new, c_new), h_new

        (_, _), hs = lax.scan(step, (h0, c0), xs)
        xs = hs
    h_last = xs[-1]
    return h_last @ params["fc_w"].T + params["fc_b"][0]


# ----------------------------------------------------------------------------
# Main
# ----------------------------------------------------------------------------
if __name__ == "__main__":
    # Small shapes consistent with StockLSTM(input_size, hidden, layers, out).
    batch = 2
    seq_len = 8
    input_size = 4
    hidden_size = 32
    num_layers = 2
    output_size = 1

    key = jax.random.PRNGKey(0)
    key, xkey = jax.random.split(key)
    x = jax.random.normal(xkey, (batch, seq_len, input_size), jnp.float32)

    params = init_params(key, input_size, hidden_size, num_layers, output_size)
    ref = reference_forward(x, params, hidden_size)

    # f32 path: tight tolerance against the pure-JAX reference.
    out = stock_lstm_forward(x, params, hidden_size, compute_dtype=jnp.float32)
    out = jax.block_until_ready(out)
    assert out.shape == (batch, output_size)
    assert jnp.allclose(out, ref, atol=1e-5, rtol=1e-5), (out, ref)

    # bf16-weight path (the "real H" configuration from the perf review):
    # looser tolerance, same kernel.
    out_bf16 = stock_lstm_forward(x, params, hidden_size,
                                  compute_dtype=jnp.bfloat16)
    out_bf16 = jax.block_until_ready(out_bf16)
    assert out_bf16.shape == (batch, output_size)
    assert jnp.allclose(out_bf16, ref, atol=5e-2, rtol=5e-2), (out_bf16, ref)

    print("KERNEL_OK")
</pallas_src>

<mosaic_0001>
module attributes {stable_mosaic.version = 11 : i64} {
  func.func @_stock_lstm_fused_kernel(%arg0: i32, %arg1: memref<64x4xf32, #tpu.memory_space<vmem>>, %arg2: memref<4x128xf32, #tpu.memory_space<vmem>>, %arg3: memref<32x128xf32, #tpu.memory_space<vmem>>, %arg4: memref<1x128xf32, #tpu.memory_space<vmem>>, %arg5: memref<32x128xf32, #tpu.memory_space<vmem>>, %arg6: memref<32x128xf32, #tpu.memory_space<vmem>>, %arg7: memref<1x128xf32, #tpu.memory_space<vmem>>, %arg8: memref<32x1xf32, #tpu.memory_space<vmem>>, %arg9: memref<1x1xf32, #tpu.memory_space<vmem>>, %arg10: memref<8x1xf32, #tpu.memory_space<vmem>>, %arg11: memref<64x128xf32, #tpu.memory_space<vmem>>, %arg12: memref<64x32xf32, #tpu.memory_space<vmem>>) attributes {dimension_semantics = [#tpu.dimension_semantics<arbitrary>], iteration_bounds = array<i64: 1>, scalar_prefetch = 0 : i64, scratch_operands = 2 : i64, tpu.core_type = #tpu.core_type<tc>, window_params = [{pipeline_mode = #tpu.pipeline_mode<synchronous>, transform_indices = @transform_0, window_bounds = array<i64: 64, 4>}, {pipeline_mode = #tpu.pipeline_mode<synchronous>, transform_indices = @transform_1, window_bounds = array<i64: 4, 128>}, {pipeline_mode = #tpu.pipeline_mode<synchronous>, transform_indices = @transform_2, window_bounds = array<i64: 32, 128>}, {pipeline_mode = #tpu.pipeline_mode<synchronous>, transform_indices = @transform_3, window_bounds = array<i64: 1, 128>}, {pipeline_mode = #tpu.pipeline_mode<synchronous>, transform_indices = @transform_4, window_bounds = array<i64: 32, 128>}, {pipeline_mode = #tpu.pipeline_mode<synchronous>, transform_indices = @transform_5, window_bounds = array<i64: 32, 128>}, {pipeline_mode = #tpu.pipeline_mode<synchronous>, transform_indices = @transform_6, window_bounds = array<i64: 1, 128>}, {pipeline_mode = #tpu.pipeline_mode<synchronous>, transform_indices = @transform_7, window_bounds = array<i64: 32, 1>}, {pipeline_mode = #tpu.pipeline_mode<synchronous>, transform_indices = @transform_8, window_bounds = array<i64: 1, 1>}, {pipeline_mode = #tpu.pipeline_mode<synchronous>, transform_indices = @transform_9, window_bounds = array<i64: 8, 1>}]} {
    %c0 = arith.constant 0 : index
    %c0_0 = arith.constant 0 : index
    %0 = vector.load %arg2[%c0, %c0_0] : memref<4x128xf32, #tpu.memory_space<vmem>>, vector<4x128xf32>
    %c0_1 = arith.constant 0 : index
    %c0_2 = arith.constant 0 : index
    %1 = vector.load %arg1[%c0_1, %c0_2] : memref<64x4xf32, #tpu.memory_space<vmem>>, vector<64x4xf32>
    %cst = arith.constant dense<0.000000e+00> : vector<64x128xf32>
    %2 = tpu.matmul %1, %0, %cst {dimension_numbers = #tpu.dot_dimension_numbers<[1], [0], [0], [1], [0, 0, 1, 1], [], []>} : vector<64x4xf32>, vector<4x128xf32>, vector<64x128xf32> -> vector<64x128xf32>
    %c0_3 = arith.constant 0 : index
    %c0_4 = arith.constant 0 : index
    %3 = vector.load %arg4[%c0_3, %c0_4] : memref<1x128xf32, #tpu.memory_space<vmem>>, vector<1x128xf32>
    %4 = vector.broadcast %3 : vector<1x128xf32> to vector<64x128xf32>
    %5 = arith.addf %2, %4 : vector<64x128xf32>
    %c0_5 = arith.constant 0 : index
    %c0_6 = arith.constant 0 : index
    %6 = vector.load %arg11[%c0_5, %c0_6] : memref<64x128xf32, #tpu.memory_space<vmem>>, vector<64x128xf32>
    tpu.vector_store %arg11[%c0_5, %c0_6], %5 {strides = array<i32>} : memref<64x128xf32, #tpu.memory_space<vmem>>, vector<64x128xf32>,
    %c0_7 = arith.constant 0 : index
    %c0_8 = arith.constant 0 : index
    %7 = vector.load %arg3[%c0_7, %c0_8] : memref<32x128xf32, #tpu.memory_space<vmem>>, vector<32x128xf32>
    %cst_9 = arith.constant 0.000000e+00 : f32
    %8 = vector.broadcast %cst_9 : f32 to vector<8x32xf32>
    %cst_10 = arith.constant 0.000000e+00 : f32
    %9 = vector.broadcast %cst_10 : f32 to vector<8x32xf32>
    %c0_i32 = arith.constant 0 : i32
    %c8_i32 = arith.constant 8 : i32
    %10 = arith.muli %c0_i32, %c8_i32 : i32
    %11 = tpu.assume_multiple %10, 8 : i32
    %12 = arith.index_cast %11 : i32 to index
    %c0_11 = arith.constant 0 : index
    %13 = vector.load %arg11[%12, %c0_11] : memref<64x128xf32, #tpu.memory_space<vmem>>, vector<8x128xf32>
    %cst_12 = arith.constant dense<0.000000e+00> : vector<8x128xf32>
    %14 = tpu.matmul %8, %7, %cst_12 {dimension_numbers = #tpu.dot_dimension_numbers<[1], [0], [0], [1], [0, 0, 1, 1], [], []>} : vector<8x32xf32>, vector<32x128xf32>, vector<8x128xf32> -> vector<8x128xf32>
    %15 = arith.addf %13, %14 : vector<8x128xf32>
    %16 = vector.extract_strided_slice %15 {offsets = [0, 0], sizes = [8, 96], strides = [1, 1]} : vector<8x128xf32> to vector<8x96xf32>
    %17 = arith.negf %16 : vector<8x96xf32>
    %18 = math.exp %17 : vector<8x96xf32>
    %cst_13 = arith.constant 1.000000e+00 : f32
    %19 = vector.broadcast %cst_13 : f32 to vector<8x96xf32>
    %20 = arith.addf %19, %18 : vector<8x96xf32>
    %21 = arith.divf %19, %20 : vector<8x96xf32>
    %22 = vector.extract_strided_slice %21 {offsets = [0, 0], sizes = [8, 32], strides = [1, 1]} : vector<8x96xf32> to vector<8x32xf32>
    %23 = vector.extract_strided_slice %21 {offsets = [0, 32], sizes = [8, 32], strides = [1, 1]} : vector<8x96xf32> to vector<8x32xf32>
    %24 = vector.extract_strided_slice %21 {offsets = [0, 64], sizes = [8, 32], strides = [1, 1]} : vector<8x96xf32> to vector<8x32xf32>
    %25 = vector.extract_strided_slice %15 {offsets = [0, 96], sizes = [8, 32], strides = [1, 1]} : vector<8x128xf32> to vector<8x32xf32>
    %26 = math.tanh %25 : vector<8x32xf32>
    %27 = arith.mulf %23, %9 : vector<8x32xf32>
    %28 = arith.mulf %22, %26 : vector<8x32xf32>
    %29 = arith.addf %27, %28 : vector<8x32xf32>
    %30 = math.tanh %29 : vector<8x32xf32>
    %31 = arith.mulf %24, %30 : vector<8x32xf32>
    %32 = arith.index_cast %11 : i32 to index
    %c0_14 = arith.constant 0 : index
    %33 = vector.load %arg12[%32, %c0_14] : memref<64x32xf32, #tpu.memory_space<vmem>>, vector<8x32xf32>
    tpu.vector_store %arg12[%32, %c0_14], %31 {strides = array<i32>} : memref<64x32xf32, #tpu.memory_space<vmem>>, vector<8x32xf32>,
    %c1_i32 = arith.constant 1 : i32
    %c8_i32_15 = arith.constant 8 : i32
    %34 = arith.muli %c1_i32, %c8_i32_15 : i32
    %35 = tpu.assume_multiple %34, 8 : i32
    %36 = arith.index_cast %35 : i32 to index
    %c0_16 = arith.constant 0 : index
    %37 = vector.load %arg11[%36, %c0_16] : memref<64x128xf32, #tpu.memory_space<vmem>>, vector<8x128xf32>
    %cst_17 = arith.constant dense<0.000000e+00> : vector<8x128xf32>
    %38 = tpu.matmul %31, %7, %cst_17 {dimension_numbers = #tpu.dot_dimension_numbers<[1], [0], [0], [1], [0, 0, 1, 1], [], []>} : vector<8x32xf32>, vector<32x128xf32>, vector<8x128xf32> -> vector<8x128xf32>
    %39 = arith.addf %37, %38 : vector<8x128xf32>
    %40 = vector.extract_strided_slice %39 {offsets = [0, 0], sizes = [8, 96], strides = [1, 1]} : vector<8x128xf32> to vector<8x96xf32>
    %41 = arith.negf %40 : vector<8x96xf32>
    %42 = math.exp %41 : vector<8x96xf32>
    %cst_18 = arith.constant 1.000000e+00 : f32
    %43 = vector.broadcast %cst_18 : f32 to vector<8x96xf32>
    %44 = arith.addf %43, %42 : vector<8x96xf32>
    %45 = arith.divf %43, %44 : vector<8x96xf32>
    %46 = vector.extract_strided_slice %45 {offsets = [0, 0], sizes = [8, 32], strides = [1, 1]} : vector<8x96xf32> to vector<8x32xf32>
    %47 = vector.extract_strided_slice %45 {offsets = [0, 32], sizes = [8, 32], strides = [1, 1]} : vector<8x96xf32> to vector<8x32xf32>
    %48 = vector.extract_strided_slice %45 {offsets = [0, 64], sizes = [8, 32], strides = [1, 1]} : vector<8x96xf32> to vector<8x32xf32>
    %49 = vector.extract_strided_slice %39 {offsets = [0, 96], sizes = [8, 32], strides = [1, 1]} : vector<8x128xf32> to vector<8x32xf32>
    %50 = math.tanh %49 : vector<8x32xf32>
    %51 = arith.mulf %47, %29 : vector<8x32xf32>
    %52 = arith.mulf %46, %50 : vector<8x32xf32>
    %53 = arith.addf %51, %52 : vector<8x32xf32>
    %54 = math.tanh %53 : vector<8x32xf32>
    %55 = arith.mulf %48, %54 : vector<8x32xf32>
    %56 = arith.index_cast %35 : i32 to index
    %c0_19 = arith.constant 0 : index
    %57 = vector.load %arg12[%56, %c0_19] : memref<64x32xf32, #tpu.memory_space<vmem>>, vector<8x32xf32>
    tpu.vector_store %arg12[%56, %c0_19], %55 {strides = array<i32>} : memref<64x32xf32, #tpu.memory_space<vmem>>, vector<8x32xf32>,
    %c2_i32 = arith.constant 2 : i32
    %c8_i32_20 = arith.constant 8 : i32
    %58 = arith.muli %c2_i32, %c8_i32_20 : i32
    %59 = tpu.assume_multiple %58, 8 : i32
    %60 = arith.index_cast %59 : i32 to index
    %c0_21 = arith.constant 0 : index
    %61 = vector.load %arg11[%60, %c0_21] : memref<64x128xf32, #tpu.memory_space<vmem>>, vector<8x128xf32>
    %cst_22 = arith.constant dense<0.000000e+00> : vector<8x128xf32>
    %62 = tpu.matmul %55, %7, %cst_22 {dimension_numbers = #tpu.dot_dimension_numbers<[1], [0], [0], [1], [0, 0, 1, 1], [], []>} : vector<8x32xf32>, vector<32x128xf32>, vector<8x128xf32> -> vector<8x128xf32>
    %63 = arith.addf %61, %62 : vector<8x128xf32>
    %64 = vector.extract_strided_slice %63 {offsets = [0, 0], sizes = [8, 96], strides = [1, 1]} : vector<8x128xf32> to vector<8x96xf32>
    %65 = arith.negf %64 : vector<8x96xf32>
    %66 = math.exp %65 : vector<8x96xf32>
    %cst_23 = arith.constant 1.000000e+00 : f32
    %67 = vector.broadcast %cst_23 : f32 to vector<8x96xf32>
    %68 = arith.addf %67, %66 : vector<8x96xf32>
    %69 = arith.divf %67, %68 : vector<8x96xf32>
    %70 = vector.extract_strided_slice %69 {offsets = [0, 0], sizes = [8, 32], strides = [1, 1]} : vector<8x96xf32> to vector<8x32xf32>
    %71 = vector.extract_strided_slice %69 {offsets = [0, 32], sizes = [8, 32], strides = [1, 1]} : vector<8x96xf32> to vector<8x32xf32>
    %72 = vector.extract_strided_slice %69 {offsets = [0, 64], sizes = [8, 32], strides = [1, 1]} : vector<8x96xf32> to vector<8x32xf32>
    %73 = vector.extract_strided_slice %63 {offsets = [0, 96], sizes = [8, 32], strides = [1, 1]} : vector<8x128xf32> to vector<8x32xf32>
    %74 = math.tanh %73 : vector<8x32xf32>
    %75 = arith.mulf %71, %53 : vector<8x32xf32>
    %76 = arith.mulf %70, %74 : vector<8x32xf32>
    %77 = arith.addf %75, %76 : vector<8x32xf32>
    %78 = math.tanh %77 : vector<8x32xf32>
    %79 = arith.mulf %72, %78 : vector<8x32xf32>
    %80 = arith.index_cast %59 : i32 to index
    %c0_24 = arith.constant 0 : index
    %81 = vector.load %arg12[%80, %c0_24] : memref<64x32xf32, #tpu.memory_space<vmem>>, vector<8x32xf32>
    tpu.vector_store %arg12[%80, %c0_24], %79 {strides = array<i32>} : memref<64x32xf32, #tpu.memory_space<vmem>>, vector<8x32xf32>,
    %c3_i32 = arith.constant 3 : i32
    %c8_i32_25 = arith.constant 8 : i32
    %82 = arith.muli %c3_i32, %c8_i32_25 : i32
    %83 = tpu.assume_multiple %82, 8 : i32
    %84 = arith.index_cast %83 : i32 to index
    %c0_26 = arith.constant 0 : index
    %85 = vector.load %arg11[%84, %c0_26] : memref<64x128xf32, #tpu.memory_space<vmem>>, vector<8x128xf32>
    %cst_27 = arith.constant dense<0.000000e+00> : vector<8x128xf32>
    %86 = tpu.matmul %79, %7, %cst_27 {dimension_numbers = #tpu.dot_dimension_numbers<[1], [0], [0], [1], [0, 0, 1, 1], [], []>} : vector<8x32xf32>, vector<32x128xf32>, vector<8x128xf32> -> vector<8x128xf32>
    %87 = arith.addf %85, %86 : vector<8x128xf32>
    %88 = vector.extract_strided_slice %87 {offsets = [0, 0], sizes = [8, 96], strides = [1, 1]} : vector<8x128xf32> to vector<8x96xf32>
    %89 = arith.negf %88 : vector<8x96xf32>
    %90 = math.exp %89 : vector<8x96xf32>
    %cst_28 = arith.constant 1.000000e+00 : f32
    %91 = vector.broadcast %cst_28 : f32 to vector<8x96xf32>
    %92 = arith.addf %91, %90 : vector<8x96xf32>
    %93 = arith.divf %91, %92 : vector<8x96xf32>
    %94 = vector.extract_strided_slice %93 {offsets = [0, 0], sizes = [8, 32], strides = [1, 1]} : vector<8x96xf32> to vector<8x32xf32>
    %95 = vector.extract_strided_slice %93 {offsets = [0, 32], sizes = [8, 32], strides = [1, 1]} : vector<8x96xf32> to vector<8x32xf32>
    %96 = vector.extract_strided_slice %93 {offsets = [0, 64], sizes = [8, 32], strides = [1, 1]} : vector<8x96xf32> to vector<8x32xf32>
    %97 = vector.extract_strided_slice %87 {offsets = [0, 96], sizes = [8, 32], strides = [1, 1]} : vector<8x128xf32> to vector<8x32xf32>
    %98 = math.tanh %97 : vector<8x32xf32>
    %99 = arith.mulf %95, %77 : vector<8x32xf32>
    %100 = arith.mulf %94, %98 : vector<8x32xf32>
    %101 = arith.addf %99, %100 : vector<8x32xf32>
    %102 = math.tanh %101 : vector<8x32xf32>
    %103 = arith.mulf %96, %102 : vector<8x32xf32>
    %104 = arith.index_cast %83 : i32 to index
    %c0_29 = arith.constant 0 : index
    %105 = vector.load %arg12[%104, %c0_29] : memref<64x32xf32, #tpu.memory_space<vmem>>, vector<8x32xf32>
    tpu.vector_store %arg12[%104, %c0_29], %103 {strides = array<i32>} : memref<64x32xf32, #tpu.memory_space<vmem>>, vector<8x32xf32>,
    %c4_i32 = arith.constant 4 : i32
    %c8_i32_30 = arith.constant 8 : i32
    %106 = arith.muli %c4_i32, %c8_i32_30 : i32
    %107 = tpu.assume_multiple %106, 8 : i32
    %108 = arith.index_cast %107 : i32 to index
    %c0_31 = arith.constant 0 : index
    %109 = vector.load %arg11[%108, %c0_31] : memref<64x128xf32, #tpu.memory_space<vmem>>, vector<8x128xf32>
    %cst_32 = arith.constant dense<0.000000e+00> : vector<8x128xf32>
    %110 = tpu.matmul %103, %7, %cst_32 {dimension_numbers = #tpu.dot_dimension_numbers<[1], [0], [0], [1], [0, 0, 1, 1], [], []>} : vector<8x32xf32>, vector<32x128xf32>, vector<8x128xf32> -> vector<8x128xf32>
    %111 = arith.addf %109, %110 : vector<8x128xf32>
    %112 = vector.extract_strided_slice %111 {offsets = [0, 0], sizes = [8, 96], strides = [1, 1]} : vector<8x128xf32> to vector<8x96xf32>
    %113 = arith.negf %112 : vector<8x96xf32>
    %114 = math.exp %113 : vector<8x96xf32>
    %cst_33 = arith.constant 1.000000e+00 : f32
    %115 = vector.broadcast %cst_33 : f32 to vector<8x96xf32>
    %116 = arith.addf %115, %114 : vector<8x96xf32>
    %117 = arith.divf %115, %116 : vector<8x96xf32>
    %118 = vector.extract_strided_slice %117 {offsets = [0, 0], sizes = [8, 32], strides = [1, 1]} : vector<8x96xf32> to vector<8x32xf32>
    %119 = vector.extract_strided_slice %117 {offsets = [0, 32], sizes = [8, 32], strides = [1, 1]} : vector<8x96xf32> to vector<8x32xf32>
    %120 = vector.extract_strided_slice %117 {offsets = [0, 64], sizes = [8, 32], strides = [1, 1]} : vector<8x96xf32> to vector<8x32xf32>
    %121 = vector.extract_strided_slice %111 {offsets = [0, 96], sizes = [8, 32], strides = [1, 1]} : vector<8x128xf32> to vector<8x32xf32>
    %122 = math.tanh %121 : vector<8x32xf32>
    %123 = arith.mulf %119, %101 : vector<8x32xf32>
    %124 = arith.mulf %118, %122 : vector<8x32xf32>
    %125 = arith.addf %123, %124 : vector<8x32xf32>
    %126 = math.tanh %125 : vector<8x32xf32>
    %127 = arith.mulf %120, %126 : vector<8x32xf32>
    %128 = arith.index_cast %107 : i32 to index
    %c0_34 = arith.constant 0 : index
    %129 = vector.load %arg12[%128, %c0_34] : memref<64x32xf32, #tpu.memory_space<vmem>>, vector<8x32xf32>
    tpu.vector_store %arg12[%128, %c0_34], %127 {strides = array<i32>} : memref<64x32xf32, #tpu.memory_space<vmem>>, vector<8x32xf32>,
    %c5_i32 = arith.constant 5 : i32
    %c8_i32_35 = arith.constant 8 : i32
    %130 = arith.muli %c5_i32, %c8_i32_35 : i32
    %131 = tpu.assume_multiple %130, 8 : i32
    %132 = arith.index_cast %131 : i32 to index
    %c0_36 = arith.constant 0 : index
    %133 = vector.load %arg11[%132, %c0_36] : memref<64x128xf32, #tpu.memory_space<vmem>>, vector<8x128xf32>
    %cst_37 = arith.constant dense<0.000000e+00> : vector<8x128xf32>
    %134 = tpu.matmul %127, %7, %cst_37 {dimension_numbers = #tpu.dot_dimension_numbers<[1], [0], [0], [1], [0, 0, 1, 1], [], []>} : vector<8x32xf32>, vector<32x128xf32>, vector<8x128xf32> -> vector<8x128xf32>
    %135 = arith.addf %133, %134 : vector<8x128xf32>
    %136 = vector.extract_strided_slice %135 {offsets = [0, 0], sizes = [8, 96], strides = [1, 1]} : vector<8x128xf32> to vector<8x96xf32>
    %137 = arith.negf %136 : vector<8x96xf32>
    %138 = math.exp %137 : vector<8x96xf32>
    %cst_38 = arith.constant 1.000000e+00 : f32
    %139 = vector.broadcast %cst_38 : f32 to vector<8x96xf32>
    %140 = arith.addf %139, %138 : vector<8x96xf32>
    %141 = arith.divf %139, %140 : vector<8x96xf32>
    %142 = vector.extract_strided_slice %141 {offsets = [0, 0], sizes = [8, 32], strides = [1, 1]} : vector<8x96xf32> to vector<8x32xf32>
    %143 = vector.extract_strided_slice %141 {offsets = [0, 32], sizes = [8, 32], strides = [1, 1]} : vector<8x96xf32> to vector<8x32xf32>
    %144 = vector.extract_strided_slice %141 {offsets = [0, 64], sizes = [8, 32], strides = [1, 1]} : vector<8x96xf32> to vector<8x32xf32>
    %145 = vector.extract_strided_slice %135 {offsets = [0, 96], sizes = [8, 32], strides = [1, 1]} : vector<8x128xf32> to vector<8x32xf32>
    %146 = math.tanh %145 : vector<8x32xf32>
    %147 = arith.mulf %143, %125 : vector<8x32xf32>
    %148 = arith.mulf %142, %146 : vector<8x32xf32>
    %149 = arith.addf %147, %148 : vector<8x32xf32>
    %150 = math.tanh %149 : vector<8x32xf32>
    %151 = arith.mulf %144, %150 : vector<8x32xf32>
    %152 = arith.index_cast %131 : i32 to index
    %c0_39 = arith.constant 0 : index
    %153 = vector.load %arg12[%152, %c0_39] : memref<64x32xf32, #tpu.memory_space<vmem>>, vector<8x32xf32>
    tpu.vector_store %arg12[%152, %c0_39], %151 {strides = array<i32>} : memref<64x32xf32, #tpu.memory_space<vmem>>, vector<8x32xf32>,
    %c6_i32 = arith.constant 6 : i32
    %c8_i32_40 = arith.constant 8 : i32
    %154 = arith.muli %c6_i32, %c8_i32_40 : i32
    %155 = tpu.assume_multiple %154, 8 : i32
    %156 = arith.index_cast %155 : i32 to index
    %c0_41 = arith.constant 0 : index
    %157 = vector.load %arg11[%156, %c0_41] : memref<64x128xf32, #tpu.memory_space<vmem>>, vector<8x128xf32>
    %cst_42 = arith.constant dense<0.000000e+00> : vector<8x128xf32>
    %158 = tpu.matmul %151, %7, %cst_42 {dimension_numbers = #tpu.dot_dimension_numbers<[1], [0], [0], [1], [0, 0, 1, 1], [], []>} : vector<8x32xf32>, vector<32x128xf32>, vector<8x128xf32> -> vector<8x128xf32>
    %159 = arith.addf %157, %158 : vector<8x128xf32>
    %160 = vector.extract_strided_slice %159 {offsets = [0, 0], sizes = [8, 96], strides = [1, 1]} : vector<8x128xf32> to vector<8x96xf32>
    %161 = arith.negf %160 : vector<8x96xf32>
    %162 = math.exp %161 : vector<8x96xf32>
    %cst_43 = arith.constant 1.000000e+00 : f32
    %163 = vector.broadcast %cst_43 : f32 to vector<8x96xf32>
    %164 = arith.addf %163, %162 : vector<8x96xf32>
    %165 = arith.divf %163, %164 : vector<8x96xf32>
    %166 = vector.extract_strided_slice %165 {offsets = [0, 0], sizes = [8, 32], strides = [1, 1]} : vector<8x96xf32> to vector<8x32xf32>
    %167 = vector.extract_strided_slice %165 {offsets = [0, 32], sizes = [8, 32], strides = [1, 1]} : vector<8x96xf32> to vector<8x32xf32>
    %168 = vector.extract_strided_slice %165 {offsets = [0, 64], sizes = [8, 32], strides = [1, 1]} : vector<8x96xf32> to vector<8x32xf32>
    %169 = vector.extract_strided_slice %159 {offsets = [0, 96], sizes = [8, 32], strides = [1, 1]} : vector<8x128xf32> to vector<8x32xf32>
    %170 = math.tanh %169 : vector<8x32xf32>
    %171 = arith.mulf %167, %149 : vector<8x32xf32>
    %172 = arith.mulf %166, %170 : vector<8x32xf32>
    %173 = arith.addf %171, %172 : vector<8x32xf32>
    %174 = math.tanh %173 : vector<8x32xf32>
    %175 = arith.mulf %168, %174 : vector<8x32xf32>
    %176 = arith.index_cast %155 : i32 to index
    %c0_44 = arith.constant 0 : index
    %177 = vector.load %arg12[%176, %c0_44] : memref<64x32xf32, #tpu.memory_space<vmem>>, vector<8x32xf32>
    tpu.vector_store %arg12[%176, %c0_44], %175 {strides = array<i32>} : memref<64x32xf32, #tpu.memory_space<vmem>>, vector<8x32xf32>,
    %c7_i32 = arith.constant 7 : i32
    %c8_i32_45 = arith.constant 8 : i32
    %178 = arith.muli %c7_i32, %c8_i32_45 : i32
    %179 = tpu.assume_multiple %178, 8 : i32
    %180 = arith.index_cast %179 : i32 to index
    %c0_46 = arith.constant 0 : index
    %181 = vector.load %arg11[%180, %c0_46] : memref<64x128xf32, #tpu.memory_space<vmem>>, vector<8x128xf32>
    %cst_47 = arith.constant dense<0.000000e+00> : vector<8x128xf32>
    %182 = tpu.matmul %175, %7, %cst_47 {dimension_numbers = #tpu.dot_dimension_numbers<[1], [0], [0], [1], [0, 0, 1, 1], [], []>} : vector<8x32xf32>, vector<32x128xf32>, vector<8x128xf32> -> vector<8x128xf32>
    %183 = arith.addf %181, %182 : vector<8x128xf32>
    %184 = vector.extract_strided_slice %183 {offsets = [0, 0], sizes = [8, 96], strides = [1, 1]} : vector<8x128xf32> to vector<8x96xf32>
    %185 = arith.negf %184 : vector<8x96xf32>
    %186 = math.exp %185 : vector<8x96xf32>
    %cst_48 = arith.constant 1.000000e+00 : f32
    %187 = vector.broadcast %cst_48 : f32 to vector<8x96xf32>
    %188 = arith.addf %187, %186 : vector<8x96xf32>
    %189 = arith.divf %187, %188 : vector<8x96xf32>
    %190 = vector.extract_strided_slice %189 {offsets = [0, 0], sizes = [8, 32], strides = [1, 1]} : vector<8x96xf32> to vector<8x32xf32>
    %191 = vector.extract_strided_slice %189 {offsets = [0, 32], sizes = [8, 32], strides = [1, 1]} : vector<8x96xf32> to vector<8x32xf32>
    %192 = vector.extract_strided_slice %189 {offsets = [0, 64], sizes = [8, 32], strides = [1, 1]} : vector<8x96xf32> to vector<8x32xf32>
    %193 = vector.extract_strided_slice %183 {offsets = [0, 96], sizes = [8, 32], strides = [1, 1]} : vector<8x128xf32> to vector<8x32xf32>
    %194 = math.tanh %193 : vector<8x32xf32>
    %195 = arith.mulf %191, %173 : vector<8x32xf32>
    %196 = arith.mulf %190, %194 : vector<8x32xf32>
    %197 = arith.addf %195, %196 : vector<8x32xf32>
    %198 = math.tanh %197 : vector<8x32xf32>
    %199 = arith.mulf %192, %198 : vector<8x32xf32>
    %200 = arith.index_cast %179 : i32 to index
    %c0_49 = arith.constant 0 : index
    %201 = vector.load %arg12[%200, %c0_49] : memref<64x32xf32, #tpu.memory_space<vmem>>, vector<8x32xf32>
    tpu.vector_store %arg12[%200, %c0_49], %199 {strides = array<i32>} : memref<64x32xf32, #tpu.memory_space<vmem>>, vector<8x32xf32>,
    %c8_i32_50 = arith.constant 8 : i32
    %c0_51 = arith.constant 0 : index
    %c0_52 = arith.constant 0 : index
    %202 = vector.load %arg5[%c0_51, %c0_52] : memref<32x128xf32, #tpu.memory_space<vmem>>, vector<32x128xf32>
    %c0_53 = arith.constant 0 : index
    %c0_54 = arith.constant 0 : index
    %203 = vector.load %arg12[%c0_53, %c0_54] : memref<64x32xf32, #tpu.memory_space<vmem>>, vector<64x32xf32>
    %cst_55 = arith.constant dense<0.000000e+00> : vector<64x128xf32>
    %204 = tpu.matmul %203, %202, %cst_55 {dimension_numbers = #tpu.dot_dimension_numbers<[1], [0], [0], [1], [0, 0, 1, 1], [], []>} : vector<64x32xf32>, vector<32x128xf32>, vector<64x128xf32> -> vector<64x128xf32>
    %c0_56 = arith.constant 0 : index
    %c0_57 = arith.constant 0 : index
    %205 = vector.load %arg7[%c0_56, %c0_57] : memref<1x128xf32, #tpu.memory_space<vmem>>, vector<1x128xf32>
    %206 = vector.broadcast %205 : vector<1x128xf32> to vector<64x128xf32>
    %207 = arith.addf %204, %206 : vector<64x128xf32>
    %c0_58 = arith.constant 0 : index
    %c0_59 = arith.constant 0 : index
    %208 = vector.load %arg11[%c0_58, %c0_59] : memref<64x128xf32, #tpu.memory_space<vmem>>, vector<64x128xf32>
    tpu.vector_store %arg11[%c0_58, %c0_59], %207 {strides = array<i32>} : memref<64x128xf32, #tpu.memory_space<vmem>>, vector<64x128xf32>,
    %c0_60 = arith.constant 0 : index
    %c0_61 = arith.constant 0 : index
    %209 = vector.load %arg6[%c0_60, %c0_61] : memref<32x128xf32, #tpu.memory_space<vmem>>, vector<32x128xf32>
    %cst_62 = arith.constant 0.000000e+00 : f32
    %210 = vector.broadcast %cst_62 : f32 to vector<8x32xf32>
    %cst_63 = arith.constant 0.000000e+00 : f32
    %211 = vector.broadcast %cst_63 : f32 to vector<8x32xf32>
    %c0_i32_64 = arith.constant 0 : i32
    %c8_i32_65 = arith.constant 8 : i32
    %212 = arith.muli %c0_i32_64, %c8_i32_65 : i32
    %213 = tpu.assume_multiple %212, 8 : i32
    %214 = arith.index_cast %213 : i32 to index
    %c0_66 = arith.constant 0 : index
    %215 = vector.load %arg11[%214, %c0_66] : memref<64x128xf32, #tpu.memory_space<vmem>>, vector<8x128xf32>
    %cst_67 = arith.constant dense<0.000000e+00> : vector<8x128xf32>
    %216 = tpu.matmul %210, %209, %cst_67 {dimension_numbers = #tpu.dot_dimension_numbers<[1], [0], [0], [1], [0, 0, 1, 1], [], []>} : vector<8x32xf32>, vector<32x128xf32>, vector<8x128xf32> -> vector<8x128xf32>
    %217 = arith.addf %215, %216 : vector<8x128xf32>
    %218 = vector.extract_strided_slice %217 {offsets = [0, 0], sizes = [8, 96], strides = [1, 1]} : vector<8x128xf32> to vector<8x96xf32>
    %219 = arith.negf %218 : vector<8x96xf32>
    %220 = math.exp %219 : vector<8x96xf32>
    %cst_68 = arith.constant 1.000000e+00 : f32
    %221 = vector.broadcast %cst_68 : f32 to vector<8x96xf32>
    %222 = arith.addf %221, %220 : vector<8x96xf32>
    %223 = arith.divf %221, %222 : vector<8x96xf32>
    %224 = vector.extract_strided_slice %223 {offsets = [0, 0], sizes = [8, 32], strides = [1, 1]} : vector<8x96xf32> to vector<8x32xf32>
    %225 = vector.extract_strided_slice %223 {offsets = [0, 32], sizes = [8, 32], strides = [1, 1]} : vector<8x96xf32> to vector<8x32xf32>
    %226 = vector.extract_strided_slice %223 {offsets = [0, 64], sizes = [8, 32], strides = [1, 1]} : vector<8x96xf32> to vector<8x32xf32>
    %227 = vector.extract_strided_slice %217 {offsets = [0, 96], sizes = [8, 32], strides = [1, 1]} : vector<8x128xf32> to vector<8x32xf32>
    %228 = math.tanh %227 : vector<8x32xf32>
    %229 = arith.mulf %225, %211 : vector<8x32xf32>
    %230 = arith.mulf %224, %228 : vector<8x32xf32>
    %231 = arith.addf %229, %230 : vector<8x32xf32>
    %232 = math.tanh %231 : vector<8x32xf32>
    %233 = arith.mulf %226, %232 : vector<8x32xf32>
    %c1_i32_69 = arith.constant 1 : i32
    %c8_i32_70 = arith.constant 8 : i32
    %234 = arith.muli %c1_i32_69, %c8_i32_70 : i32
    %235 = tpu.assume_multiple %234, 8 : i32
    %236 = arith.index_cast %235 : i32 to index
    %c0_71 = arith.constant 0 : index
    %237 = vector.load %arg11[%236, %c0_71] : memref<64x128xf32, #tpu.memory_space<vmem>>, vector<8x128xf32>
    %cst_72 = arith.constant dense<0.000000e+00> : vector<8x128xf32>
    %238 = tpu.matmul %233, %209, %cst_72 {dimension_numbers = #tpu.dot_dimension_numbers<[1], [0], [0], [1], [0, 0, 1, 1], [], []>} : vector<8x32xf32>, vector<32x128xf32>, vector<8x128xf32> -> vector<8x128xf32>
    %239 = arith.addf %237, %238 : vector<8x128xf32>
    %240 = vector.extract_strided_slice %239 {offsets = [0, 0], sizes = [8, 96], strides = [1, 1]} : vector<8x128xf32> to vector<8x96xf32>
    %241 = arith.negf %240 : vector<8x96xf32>
    %242 = math.exp %241 : vector<8x96xf32>
    %cst_73 = arith.constant 1.000000e+00 : f32
    %243 = vector.broadcast %cst_73 : f32 to vector<8x96xf32>
    %244 = arith.addf %243, %242 : vector<8x96xf32>
    %245 = arith.divf %243, %244 : vector<8x96xf32>
    %246 = vector.extract_strided_slice %245 {offsets = [0, 0], sizes = [8, 32], strides = [1, 1]} : vector<8x96xf32> to vector<8x32xf32>
    %247 = vector.extract_strided_slice %245 {offsets = [0, 32], sizes = [8, 32], strides = [1, 1]} : vector<8x96xf32> to vector<8x32xf32>
    %248 = vector.extract_strided_slice %245 {offsets = [0, 64], sizes = [8, 32], strides = [1, 1]} : vector<8x96xf32> to vector<8x32xf32>
    %249 = vector.extract_strided_slice %239 {offsets = [0, 96], sizes = [8, 32], strides = [1, 1]} : vector<8x128xf32> to vector<8x32xf32>
    %250 = math.tanh %249 : vector<8x32xf32>
    %251 = arith.mulf %247, %231 : vector<8x32xf32>
    %252 = arith.mulf %246, %250 : vector<8x32xf32>
    %253 = arith.addf %251, %252 : vector<8x32xf32>
    %254 = math.tanh %253 : vector<8x32xf32>
    %255 = arith.mulf %248, %254 : vector<8x32xf32>
    %c2_i32_74 = arith.constant 2 : i32
    %c8_i32_75 = arith.constant 8 : i32
    %256 = arith.muli %c2_i32_74, %c8_i32_75 : i32
    %257 = tpu.assume_multiple %256, 8 : i32
    %258 = arith.index_cast %257 : i32 to index
    %c0_76 = arith.constant 0 : index
    %259 = vector.load %arg11[%258, %c0_76] : memref<64x128xf32, #tpu.memory_space<vmem>>, vector<8x128xf32>
    %cst_77 = arith.constant dense<0.000000e+00> : vector<8x128xf32>
    %260 = tpu.matmul %255, %209, %cst_77 {dimension_numbers = #tpu.dot_dimension_numbers<[1], [0], [0], [1], [0, 0, 1, 1], [], []>} : vector<8x32xf32>, vector<32x128xf32>, vector<8x128xf32> -> vector<8x128xf32>
    %261 = arith.addf %259, %260 : vector<8x128xf32>
    %262 = vector.extract_strided_slice %261 {offsets = [0, 0], sizes = [8, 96], strides = [1, 1]} : vector<8x128xf32> to vector<8x96xf32>
    %263 = arith.negf %262 : vector<8x96xf32>
    %264 = math.exp %263 : vector<8x96xf32>
    %cst_78 = arith.constant 1.000000e+00 : f32
    %265 = vector.broadcast %cst_78 : f32 to vector<8x96xf32>
    %266 = arith.addf %265, %264 : vector<8x96xf32>
    %267 = arith.divf %265, %266 : vector<8x96xf32>
    %268 = vector.extract_strided_slice %267 {offsets = [0, 0], sizes = [8, 32], strides = [1, 1]} : vector<8x96xf32> to vector<8x32xf32>
    %269 = vector.extract_strided_slice %267 {offsets = [0, 32], sizes = [8, 32], strides = [1, 1]} : vector<8x96xf32> to vector<8x32xf32>
    %270 = vector.extract_strided_slice %267 {offsets = [0, 64], sizes = [8, 32], strides = [1, 1]} : vector<8x96xf32> to vector<8x32xf32>
    %271 = vector.extract_strided_slice %261 {offsets = [0, 96], sizes = [8, 32], strides = [1, 1]} : vector<8x128xf32> to vector<8x32xf32>
    %272 = math.tanh %271 : vector<8x32xf32>
    %273 = arith.mulf %269, %253 : vector<8x32xf32>
    %274 = arith.mulf %268, %272 : vector<8x32xf32>
    %275 = arith.addf %273, %274 : vector<8x32xf32>
    %276 = math.tanh %275 : vector<8x32xf32>
    %277 = arith.mulf %270, %276 : vector<8x32xf32>
    %c3_i32_79 = arith.constant 3 : i32
    %c8_i32_80 = arith.constant 8 : i32
    %278 = arith.muli %c3_i32_79, %c8_i32_80 : i32
    %279 = tpu.assume_multiple %278, 8 : i32
    %280 = arith.index_cast %279 : i32 to index
    %c0_81 = arith.constant 0 : index
    %281 = vector.load %arg11[%280, %c0_81] : memref<64x128xf32, #tpu.memory_space<vmem>>, vector<8x128xf32>
    %cst_82 = arith.constant dense<0.000000e+00> : vector<8x128xf32>
    %282 = tpu.matmul %277, %209, %cst_82 {dimension_numbers = #tpu.dot_dimension_numbers<[1], [0], [0], [1], [0, 0, 1, 1], [], []>} : vector<8x32xf32>, vector<32x128xf32>, vector<8x128xf32> -> vector<8x128xf32>
    %283 = arith.addf %281, %282 : vector<8x128xf32>
    %284 = vector.extract_strided_slice %283 {offsets = [0, 0], sizes = [8, 96], strides = [1, 1]} : vector<8x128xf32> to vector<8x96xf32>
    %285 = arith.negf %284 : vector<8x96xf32>
    %286 = math.exp %285 : vector<8x96xf32>
    %cst_83 = arith.constant 1.000000e+00 : f32
    %287 = vector.broadcast %cst_83 : f32 to vector<8x96xf32>
    %288 = arith.addf %287, %286 : vector<8x96xf32>
    %289 = arith.divf %287, %288 : vector<8x96xf32>
    %290 = vector.extract_strided_slice %289 {offsets = [0, 0], sizes = [8, 32], strides = [1, 1]} : vector<8x96xf32> to vector<8x32xf32>
    %291 = vector.extract_strided_slice %289 {offsets = [0, 32], sizes = [8, 32], strides = [1, 1]} : vector<8x96xf32> to vector<8x32xf32>
    %292 = vector.extract_strided_slice %289 {offsets = [0, 64], sizes = [8, 32], strides = [1, 1]} : vector<8x96xf32> to vector<8x32xf32>
    %293 = vector.extract_strided_slice %283 {offsets = [0, 96], sizes = [8, 32], strides = [1, 1]} : vector<8x128xf32> to vector<8x32xf32>
    %294 = math.tanh %293 : vector<8x32xf32>
    %295 = arith.mulf %291, %275 : vector<8x32xf32>
    %296 = arith.mulf %290, %294 : vector<8x32xf32>
    %297 = arith.addf %295, %296 : vector<8x32xf32>
    %298 = math.tanh %297 : vector<8x32xf32>
    %299 = arith.mulf %292, %298 : vector<8x32xf32>
    %c4_i32_84 = arith.constant 4 : i32
    %c8_i32_85 = arith.constant 8 : i32
    %300 = arith.muli %c4_i32_84, %c8_i32_85 : i32
    %301 = tpu.assume_multiple %300, 8 : i32
    %302 = arith.index_cast %301 : i32 to index
    %c0_86 = arith.constant 0 : index
    %303 = vector.load %arg11[%302, %c0_86] : memref<64x128xf32, #tpu.memory_space<vmem>>, vector<8x128xf32>
    %cst_87 = arith.constant dense<0.000000e+00> : vector<8x128xf32>
    %304 = tpu.matmul %299, %209, %cst_87 {dimension_numbers = #tpu.dot_dimension_numbers<[1], [0], [0], [1], [0, 0, 1, 1], [], []>} : vector<8x32xf32>, vector<32x128xf32>, vector<8x128xf32> -> vector<8x128xf32>
    %305 = arith.addf %303, %304 : vector<8x128xf32>
    %306 = vector.extract_strided_slice %305 {offsets = [0, 0], sizes = [8, 96], strides = [1, 1]} : vector<8x128xf32> to vector<8x96xf32>
    %307 = arith.negf %306 : vector<8x96xf32>
    %308 = math.exp %307 : vector<8x96xf32>
    %cst_88 = arith.constant 1.000000e+00 : f32
    %309 = vector.broadcast %cst_88 : f32 to vector<8x96xf32>
    %310 = arith.addf %309, %308 : vector<8x96xf32>
    %311 = arith.divf %309, %310 : vector<8x96xf32>
    %312 = vector.extract_strided_slice %311 {offsets = [0, 0], sizes = [8, 32], strides = [1, 1]} : vector<8x96xf32> to vector<8x32xf32>
    %313 = vector.extract_strided_slice %311 {offsets = [0, 32], sizes = [8, 32], strides = [1, 1]} : vector<8x96xf32> to vector<8x32xf32>
    %314 = vector.extract_strided_slice %311 {offsets = [0, 64], sizes = [8, 32], strides = [1, 1]} : vector<8x96xf32> to vector<8x32xf32>
    %315 = vector.extract_strided_slice %305 {offsets = [0, 96], sizes = [8, 32], strides = [1, 1]} : vector<8x128xf32> to vector<8x32xf32>
    %316 = math.tanh %315 : vector<8x32xf32>
    %317 = arith.mulf %313, %297 : vector<8x32xf32>
    %318 = arith.mulf %312, %316 : vector<8x32xf32>
    %319 = arith.addf %317, %318 : vector<8x32xf32>
    %320 = math.tanh %319 : vector<8x32xf32>
    %321 = arith.mulf %314, %320 : vector<8x32xf32>
    %c5_i32_89 = arith.constant 5 : i32
    %c8_i32_90 = arith.constant 8 : i32
    %322 = arith.muli %c5_i32_89, %c8_i32_90 : i32
    %323 = tpu.assume_multiple %322, 8 : i32
    %324 = arith.index_cast %323 : i32 to index
    %c0_91 = arith.constant 0 : index
    %325 = vector.load %arg11[%324, %c0_91] : memref<64x128xf32, #tpu.memory_space<vmem>>, vector<8x128xf32>
    %cst_92 = arith.constant dense<0.000000e+00> : vector<8x128xf32>
    %326 = tpu.matmul %321, %209, %cst_92 {dimension_numbers = #tpu.dot_dimension_numbers<[1], [0], [0], [1], [0, 0, 1, 1], [], []>} : vector<8x32xf32>, vector<32x128xf32>, vector<8x128xf32> -> vector<8x128xf32>
    %327 = arith.addf %325, %326 : vector<8x128xf32>
    %328 = vector.extract_strided_slice %327 {offsets = [0, 0], sizes = [8, 96], strides = [1, 1]} : vector<8x128xf32> to vector<8x96xf32>
    %329 = arith.negf %328 : vector<8x96xf32>
    %330 = math.exp %329 : vector<8x96xf32>
    %cst_93 = arith.constant 1.000000e+00 : f32
    %331 = vector.broadcast %cst_93 : f32 to vector<8x96xf32>
    %332 = arith.addf %331, %330 : vector<8x96xf32>
    %333 = arith.divf %331, %332 : vector<8x96xf32>
    %334 = vector.extract_strided_slice %333 {offsets = [0, 0], sizes = [8, 32], strides = [1, 1]} : vector<8x96xf32> to vector<8x32xf32>
    %335 = vector.extract_strided_slice %333 {offsets = [0, 32], sizes = [8, 32], strides = [1, 1]} : vector<8x96xf32> to vector<8x32xf32>
    %336 = vector.extract_strided_slice %333 {offsets = [0, 64], sizes = [8, 32], strides = [1, 1]} : vector<8x96xf32> to vector<8x32xf32>
    %337 = vector.extract_strided_slice %327 {offsets = [0, 96], sizes = [8, 32], strides = [1, 1]} : vector<8x128xf32> to vector<8x32xf32>
    %338 = math.tanh %337 : vector<8x32xf32>
    %339 = arith.mulf %335, %319 : vector<8x32xf32>
    %340 = arith.mulf %334, %338 : vector<8x32xf32>
    %341 = arith.addf %339, %340 : vector<8x32xf32>
    %342 = math.tanh %341 : vector<8x32xf32>
    %343 = arith.mulf %336, %342 : vector<8x32xf32>
    %c6_i32_94 = arith.constant 6 : i32
    %c8_i32_95 = arith.constant 8 : i32
    %344 = arith.muli %c6_i32_94, %c8_i32_95 : i32
    %345 = tpu.assume_multiple %344, 8 : i32
    %346 = arith.index_cast %345 : i32 to index
    %c0_96 = arith.constant 0 : index
    %347 = vector.load %arg11[%346, %c0_96] : memref<64x128xf32, #tpu.memory_space<vmem>>, vector<8x128xf32>
    %cst_97 = arith.constant dense<0.000000e+00> : vector<8x128xf32>
    %348 = tpu.matmul %343, %209, %cst_97 {dimension_numbers = #tpu.dot_dimension_numbers<[1], [0], [0], [1], [0, 0, 1, 1], [], []>} : vector<8x32xf32>, vector<32x128xf32>, vector<8x128xf32> -> vector<8x128xf32>
    %349 = arith.addf %347, %348 : vector<8x128xf32>
    %350 = vector.extract_strided_slice %349 {offsets = [0, 0], sizes = [8, 96], strides = [1, 1]} : vector<8x128xf32> to vector<8x96xf32>
    %351 = arith.negf %350 : vector<8x96xf32>
    %352 = math.exp %351 : vector<8x96xf32>
    %cst_98 = arith.constant 1.000000e+00 : f32
    %353 = vector.broadcast %cst_98 : f32 to vector<8x96xf32>
    %354 = arith.addf %353, %352 : vector<8x96xf32>
    %355 = arith.divf %353, %354 : vector<8x96xf32>
    %356 = vector.extract_strided_slice %355 {offsets = [0, 0], sizes = [8, 32], strides = [1, 1]} : vector<8x96xf32> to vector<8x32xf32>
    %357 = vector.extract_strided_slice %355 {offsets = [0, 32], sizes = [8, 32], strides = [1, 1]} : vector<8x96xf32> to vector<8x32xf32>
    %358 = vector.extract_strided_slice %355 {offsets = [0, 64], sizes = [8, 32], strides = [1, 1]} : vector<8x96xf32> to vector<8x32xf32>
    %359 = vector.extract_strided_slice %349 {offsets = [0, 96], sizes = [8, 32], strides = [1, 1]} : vector<8x128xf32> to vector<8x32xf32>
    %360 = math.tanh %359 : vector<8x32xf32>
    %361 = arith.mulf %357, %341 : vector<8x32xf32>
    %362 = arith.mulf %356, %360 : vector<8x32xf32>
    %363 = arith.addf %361, %362 : vector<8x32xf32>
    %364 = math.tanh %363 : vector<8x32xf32>
    %365 = arith.mulf %358, %364 : vector<8x32xf32>
    %c7_i32_99 = arith.constant 7 : i32
    %c8_i32_100 = arith.constant 8 : i32
    %366 = arith.muli %c7_i32_99, %c8_i32_100 : i32
    %367 = tpu.assume_multiple %366, 8 : i32
    %368 = arith.index_cast %367 : i32 to index
    %c0_101 = arith.constant 0 : index
    %369 = vector.load %arg11[%368, %c0_101] : memref<64x128xf32, #tpu.memory_space<vmem>>, vector<8x128xf32>
    %cst_102 = arith.constant dense<0.000000e+00> : vector<8x128xf32>
    %370 = tpu.matmul %365, %209, %cst_102 {dimension_numbers = #tpu.dot_dimension_numbers<[1], [0], [0], [1], [0, 0, 1, 1], [], []>} : vector<8x32xf32>, vector<32x128xf32>, vector<8x128xf32> -> vector<8x128xf32>
    %371 = arith.addf %369, %370 : vector<8x128xf32>
    %372 = vector.extract_strided_slice %371 {offsets = [0, 0], sizes = [8, 96], strides = [1, 1]} : vector<8x128xf32> to vector<8x96xf32>
    %373 = arith.negf %372 : vector<8x96xf32>
    %374 = math.exp %373 : vector<8x96xf32>
    %cst_103 = arith.constant 1.000000e+00 : f32
    %375 = vector.broadcast %cst_103 : f32 to vector<8x96xf32>
    %376 = arith.addf %375, %374 : vector<8x96xf32>
    %377 = arith.divf %375, %376 : vector<8x96xf32>
    %378 = vector.extract_strided_slice %377 {offsets = [0, 0], sizes = [8, 32], strides = [1, 1]} : vector<8x96xf32> to vector<8x32xf32>
    %379 = vector.extract_strided_slice %377 {offsets = [0, 32], sizes = [8, 32], strides = [1, 1]} : vector<8x96xf32> to vector<8x32xf32>
    %380 = vector.extract_strided_slice %377 {offsets = [0, 64], sizes = [8, 32], strides = [1, 1]} : vector<8x96xf32> to vector<8x32xf32>
    %381 = vector.extract_strided_slice %371 {offsets = [0, 96], sizes = [8, 32], strides = [1, 1]} : vector<8x128xf32> to vector<8x32xf32>
    %382 = math.tanh %381 : vector<8x32xf32>
    %383 = arith.mulf %379, %363 : vector<8x32xf32>
    %384 = arith.mulf %378, %382 : vector<8x32xf32>
    %385 = arith.addf %383, %384 : vector<8x32xf32>
    %386 = math.tanh %385 : vector<8x32xf32>
    %387 = arith.mulf %380, %386 : vector<8x32xf32>
    %c8_i32_104 = arith.constant 8 : i32
    %c0_105 = arith.constant 0 : index
    %c0_106 = arith.constant 0 : index
    %388 = vector.load %arg8[%c0_105, %c0_106] : memref<32x1xf32, #tpu.memory_space<vmem>>, vector<32x1xf32>
    %cst_107 = arith.constant dense<0.000000e+00> : vector<8x1xf32>
    %389 = tpu.matmul %387, %388, %cst_107 {dimension_numbers = #tpu.dot_dimension_numbers<[1], [0], [0], [1], [0, 0, 1, 1], [], []>} : vector<8x32xf32>, vector<32x1xf32>, vector<8x1xf32> -> vector<8x1xf32>
    %c0_108 = arith.constant 0 : index
    %c0_109 = arith.constant 0 : index
    %390 = vector.load %arg9[%c0_108, %c0_109] : memref<1x1xf32, #tpu.memory_space<vmem>>, vector<1x1xf32>
    %391 = vector.broadcast %390 : vector<1x1xf32> to vector<8x1xf32>
    %392 = arith.addf %389, %391 : vector<8x1xf32>
    %c0_110 = arith.constant 0 : index
    %c0_111 = arith.constant 0 : index
    %393 = vector.load %arg10[%c0_110, %c0_111] : memref<8x1xf32, #tpu.memory_space<vmem>>, vector<8x1xf32>
    tpu.vector_store %arg10[%c0_110, %c0_111], %392 {strides = array<i32>} : memref<8x1xf32, #tpu.memory_space<vmem>>, vector<8x1xf32>,
    return
  }
  func.func @transform_0(%arg0: i32) -> (i32, i32) {
    %c0_i32 = arith.constant 0 : i32
    %c0_i32_0 = arith.constant 0 : i32
    %c0_i32_1 = arith.constant 0 : i32
    return %c0_i32, %c0_i32_0 : i32, i32
  }
  func.func @transform_1(%arg0: i32) -> (i32, i32) {
    %c0_i32 = arith.constant 0 : i32
    %c0_i32_0 = arith.constant 0 : i32
    %c0_i32_1 = arith.constant 0 : i32
    return %c0_i32, %c0_i32_0 : i32, i32
  }
  func.func @transform_2(%arg0: i32) -> (i32, i32) {
    %c0_i32 = arith.constant 0 : i32
    %c0_i32_0 = arith.constant 0 : i32
    %c0_i32_1 = arith.constant 0 : i32
    return %c0_i32, %c0_i32_0 : i32, i32
  }
  func.func @transform_3(%arg0: i32) -> (i32, i32) {
    %c0_i32 = arith.constant 0 : i32
    %c0_i32_0 = arith.constant 0 : i32
    %c0_i32_1 = arith.constant 0 : i32
    return %c0_i32, %c0_i32_0 : i32, i32
  }
  func.func @transform_4(%arg0: i32) -> (i32, i32) {
    %c0_i32 = arith.constant 0 : i32
    %c0_i32_0 = arith.constant 0 : i32
    %c0_i32_1 = arith.constant 0 : i32
    return %c0_i32, %c0_i32_0 : i32, i32
  }
  func.func @transform_5(%arg0: i32) -> (i32, i32) {
    %c0_i32 = arith.constant 0 : i32
    %c0_i32_0 = arith.constant 0 : i32
    %c0_i32_1 = arith.constant 0 : i32
    return %c0_i32, %c0_i32_0 : i32, i32
  }
  func.func @transform_6(%arg0: i32) -> (i32, i32) {
    %c0_i32 = arith.constant 0 : i32
    %c0_i32_0 = arith.constant 0 : i32
    %c0_i32_1 = arith.constant 0 : i32
    return %c0_i32, %c0_i32_0 : i32, i32
  }
  func.func @transform_7(%arg0: i32) -> (i32, i32) {
    %c0_i32 = arith.constant 0 : i32
    %c0_i32_0 = arith.constant 0 : i32
    %c0_i32_1 = arith.constant 0 : i32
    return %c0_i32, %c0_i32_0 : i32, i32
  }
  func.func @transform_8(%arg0: i32) -> (i32, i32) {
    %c0_i32 = arith.constant 0 : i32
    %c0_i32_0 = arith.constant 0 : i32
    %c0_i32_1 = arith.constant 0 : i32
    return %c0_i32, %c0_i32_0 : i32, i32
  }
  func.func @transform_9(%arg0: i32) -> (i32, i32) {
    %c0_i32 = arith.constant 0 : i32
    %c0_i32_0 = arith.constant 0 : i32
    %c0_i32_1 = arith.constant 0 : i32
    return %c0_i32, %c0_i32_0 : i32, i32
  }
}

</mosaic_0001>

<bundles_post_ra>
// kernel: tpu_custom_call.1
= control target key start
LH: loop header
LB: loop body
LE: loop exit
PB: predicated region body
PF: predicated region fallthrough
CT: control target
= control target key end

     0   :  { %vm75_vm0 = vcmask 1043456   ;;  %vm50_vm1 = vcmask 31744   ;;  %v2712_v0 = vmov 0.0|0.0   ;;  %vm2713_vm2 = vmmov 0   ;;  %s2715_s23 = smov 32   ;;  %s3126_s2 = inlined_call_operand.vmem [shape: f32[32,128], index: 2, kind: input, shape index: {}]   ;;  %s3127_s1 = inlined_call_operand.vmem [shape: f32[4,128], index: 1, kind: input, shape index: {}]   ;;  %s3128_s0 = inlined_call_operand.vmem [shape: f32[64,4], index: 0, kind: input, shape index: {}]   ;;  %s3129_s3 = inlined_call_operand.vmem [shape: f32[1,128], index: 3, kind: input, shape index: {}]   ;;  %s3130_s4 = inlined_call_operand.vmem [shape: f32[32,128], index: 4, kind: input, shape index: {}]   ;;  %s3131_s5 = inlined_call_operand.vmem [shape: f32[32,128], index: 5, kind: input, shape index: {}]   ;;  %s3132_s6 = inlined_call_operand.vmem [shape: f32[1,128], index: 6, kind: input, shape index: {}]   ;;  %s3133_s7 = inlined_call_operand.vmem [shape: f32[32,1], index: 7, kind: input, shape index: {}]   ;;  %s3134_s8 = inlined_call_operand.<no memory space> [shape: f32[1,1], index: 8, kind: input, shape index: {}]   ;;  %s3135_s9 = inlined_call_operand.vmem [shape: f32[8,1], index: 9, kind: output, shape index: {}]  }
   0x1   :  { %2469 = vmatprep.subr.bf16.mxu1 %v2712_v0  ;;  %v192_v1 = vld [vmem:[%s3126_s2] sm:$0xff]  ;;  %v193_v2 = vld [vmem:[%s3126_s2 + $0x8] sm:$0xff]  ;;  %v194_v7 = vld [vmem:[%s3126_s2 + $0x10] sm:$0xff]  ;;  %v2714_v8 = vmov 0.0   ;;  %vm197_vm3 = vcmask 261120   ;;  %vm2085_vm4 = vcmask 7168  }
   0x2   :  { %v34_v3 = vld [vmem:[%s3127_s1] sm:$0xf]  ;;  %v2777_v4 = vpack.c.bf16 %v193_v2, %v192_v1  ;;  %v36_v6 = vld [vmem:[%s3128_s0 + $0x8] sm:$0xff]  ;;  %2270 = vmatprep.mubr.msk.f32.mxu1 %vm2713_vm2, %v2714_v8  ;;  %v195_v9 = vld [vmem:[%s3126_s2 + $0x18] sm:$0xff] }
   0x3   :  { %2248 = vmatprep.subr.msk.mxu0 %vm75_vm0, %v34_v3  ;;  %v35_v5 = vld [vmem:[%s3128_s0] sm:$0xff]  ;;  %v2798_v10 = vpack.c.bf16 %v195_v9, %v194_v7  ;;  %v37_v46 = vld [vmem:[%s3128_s0 + $0x10] sm:$0xff]  ;;  %v38_v47 = vld [vmem:[%s3128_s0 + $0x18] sm:$0xff] }
   0x4   :  { %2249 = vmatpush3.msk.msra.mxu0 %vm75_vm0, %v34_v3  ;;  %2250 = vmatprep.mubr.msk.f32.mxu0 %vm50_vm1, %v35_v5  ;;  %v2818_v12 = vld [vmem:[%s3129_s3] ss:$0 sm:$0xff]  ;;  %s2716_s3 = smov 64   ;;  %v40_v49 = vld [vmem:[%s3128_s0 + $0x28] sm:$0xff]  ;;  %v41_v50 = vld [vmem:[%s3128_s0 + $0x30] sm:$0xff] }
   0x5   :  { %2471 = vmatpush3.bf16.msra.mxu1 %v2777_v4  ;;  %2251 = vmatmul.mubr.msk.f32.vlgmr.msra.gmra.mrb[0].mxu0 %vm50_vm1, %v36_v6  ;;  %v39_v48 = vld [vmem:[%s3128_s0 + $0x20] sm:$0xff]  ;;  %v42_v51 = vld [vmem:[%s3128_s0 + $0x38] sm:$0xff] }
   0x6   :  { %2472 = vmatprep.subr.bf16.mxu1 %v2712_v0  ;;  %2481 = vmatprep.subr.bf16.mxu0 %v2712_v0 }
   0x7   :  { %2483 = vmatpush3.bf16.msra.mxu0 %v2777_v4  ;;  %2253 = vmatprep.mubr.msk.f32.mxu0 %vm50_vm1, %v37_v46 }
   0x8   :  { %2484 = vmatprep.subr.bf16.mxu0 %v2712_v0 }
   0x9   :  { %2474 = vmatpush3.bf16.msra.mxu1 %v2798_v10  ;;  %2254 = vmatmul.mubr.msk.f32.gmra.mrb[2].mxu0 %vm50_vm1, %v38_v47 }
   0xa   :  { %2475 = vmatprep.subr.bf16.mxu1 %v2712_v0  ;;  %2256 = vmatprep.mubr.msk.f32.mxu0 %vm50_vm1, %v39_v48 }
   0xb   :  { %2486 = vmatpush3.bf16.msra.mxu0 %v2798_v10 }
   0xc   :  { %2271 = vmatmul.mubr.f32.vlgmr.msra.gmra.mrb[0].mxu1 %v2714_v8  ;;  %2493 = vmatprep.subr.bf16.mxu0 %v2712_v0 }
   0xd   :  { %2477 = vmatpush3.bf16.msra.mxu1 %v2777_v4  ;;  %2281 = vmatprep.mubr.msk.f32.mxu1 %vm2713_vm2, %v2714_v8 }
   0xe   :  { %2478 = vmatprep.subr.bf16.mxu1 %v2712_v0  ;;  %2257 = vmatmul.mubr.msk.f32.gmra.mrb[4].mxu0 %vm50_vm1, %v40_v49 }
   0xf   :  { %2259 = vmatprep.mubr.msk.f32.mxu0 %vm50_vm1, %v41_v50 }
  0x11   :  { %2480 = vmatpush3.bf16.msra.mxu1 %v2798_v10 }
  0x12   :  { %2487 = vmatprep.subr.bf16.mxu1 %v2712_v0  ;;  %2260 = vmatmul.mubr.msk.f32.gmra.mrb[6].mxu0 %vm50_vm1, %v42_v51 }
  0x13   :  { %2292 = vmatprep.mubr.msk.f32.mxu0 %vm2713_vm2, %v2714_v8 }
  0xd8   :  { %v2252_v11 = vpop.f32.mrb[0].mxu0 }
  0xd9   :  { %v145_v13 = vpop.f32.mrb[1].mxu0  ;;  %v151_v32 = vadd.f32 %v2252_v11, %v2818_v12 }
  0xda   :  { %v146_v14 = vadd.f32 %v2818_v12, %v145_v13 }
  0xdc   :  { %v2255_v55 = vpop.f32.mrb[2].mxu0 }
  0xdd   :  { %v155_v56 = vpop.f32.mrb[3].mxu0 }
  0xde   :  { %v156_v62 = vadd.f32 %v2818_v12, %v155_v56 }
  0xdf   :  { %v267_v15 = vpop.f32.mrb[0].mxu1 }
  0xe0   :  { %v271_v16 = vadd.f32 %v267_v15, %v146_v14  ;;  %v2272_v17 = vpop.f32.mrb[1].mxu1 }
  0xe1   :  { %v2864_v57 = vpop.f32.mrb[4].mxu0 }
  0xe2   :  { %2584 = vtanh.f32 %v271_v16  ;;  %v2101_v19 = vmul.f32 -1.442695, %v271_v16  ;;  %v2866_v58 = vpop.f32.mrb[5].mxu0 }
  0xe4   :  { %2586 = vpow2.f32 %v2101_v19 }
  0xe5   :  { %v2868_v59 = vpop.f32.mrb[6].mxu0 }
  0xe6   :  { %v2870_v60 = vpop.f32.mrb[7].mxu0 }
  0xec   :  { %v2585_v18 = vpop.eup %2584 }
  0xed   :  { %281 = vrot.lane.b32.xlu0 %v2585_v18, %s2715_s23 }
  0xee   :  { %v2587_v20 = vpop.eup %2586 }
  0xef   :  { %v275_v21 = vadd.f32 1.0, %v2587_v20 }
  0xf1   :  { %2588 = vrcp.f32 %v275_v21  ;;  %v161_v21 = vadd.f32 %v2255_v55, %v2818_v12 }
  0xfb   :  { %v2589_v22 = vpop.eup %2588 }
  0xfc   :  { %v279_v25 = vmul.f32 0.0, %v2589_v22 }
 0x15f   :  { %v282_v23 = vpop.permute.xlu0 %281 }
 0x160   :  { %v284_v24 = vmul.f32 %v2589_v22, %v282_v23 }
 0x162   :  { %286 = vrot.lane.b32.xlu0 %v284_v24, %s2715_s23 }
 0x1d4   :  { %v287_v26 = vpop.permute.xlu0 %286 }
 0x1d5   :  { %v289_v27 = vadd.f32 %v287_v26, %v279_v25 }
 0x1d7   :  { %2590 = vtanh.f32 %v289_v27 }
 0x1e1   :  { %v2591_v28 = vpop.eup %2590 }
 0x1e2   :  { %292 = vrot.lane.b32.xlu1 %v2591_v28, %s2715_s23 }
 0x254   :  { %v293_v29 = vpop.permute.xlu1 %292 }
 0x255   :  { %v295_v30 = vmul.f32 %v2589_v22, %v293_v29 }
 0x257   :  { %297 = vrot.lane.b32.xlu1 %v295_v30, %s2716_s3 }
 0x2c9   :  { %v298_v31 = vpop.permute.xlu1 %297 }
 0x2ca   :  { %300 = vst.msk [vmem:[#allocation3] sm:$0xff] %vm197_vm3, %v298_v31  ;;  %2282 = vmatmul.mubr.msk.f32.vlgmr.msra.gmra.mrb[2].mxu1 %vm197_vm3, %v298_v31 }
 0x2cb   :  { %2489 = vmatpush3.bf16.msra.mxu1 %v2777_v4  ;;  %2303 = vmatprep.mubr.msk.f32.mxu1 %vm2713_vm2, %v2714_v8 }
 0x2cc   :  { %2490 = vmatprep.subr.bf16.mxu1 %v2712_v0 }
 0x2cf   :  { %2492 = vmatpush3.bf16.msra.mxu1 %v2798_v10 }
 0x2d0   :  { %2499 = vmatprep.subr.bf16.mxu1 %v2712_v0 }
 0x39d   :  { %v371_v33 = vpop.f32.mrb[2].mxu1 }
 0x39e   :  { %v375_v34 = vadd.f32 %v371_v33, %v151_v32  ;;  %v2283_v35 = vpop.f32.mrb[3].mxu1 }
 0x3a0   :  { %2592 = vtanh.f32 %v375_v34  ;;  %v2103_v37 = vmul.f32 -1.442695, %v375_v34 }
 0x3a2   :  { %2594 = vpow2.f32 %v2103_v37 }
 0x3aa   :  { %v2593_v36 = vpop.eup %2592 }
 0x3ab   :  { %385 = vrot.lane.b32.xlu0 %v2593_v36, %s2715_s23 }
 0x3ac   :  { %v2595_v38 = vpop.eup %2594 }
 0x3ad   :  { %v379_v39 = vadd.f32 1.0, %v2595_v38 }
 0x3af   :  { %2596 = vrcp.f32 %v379_v39  ;;  %v166_v39 = vadd.f32 %v2818_v12, %v2866_v58  ;;  %v171_v58 = vadd.f32 %v2864_v57, %v2818_v12 }
 0x3b9   :  { %v2597_v40 = vpop.eup %2596 }
 0x3ba   :  { %v383_v43 = vmul.f32 %v2597_v40, %v289_v27 }
 0x41d   :  { %v386_v41 = vpop.permute.xlu0 %385 }
 0x41e   :  { %v388_v42 = vmul.f32 %v2597_v40, %v386_v41 }
 0x420   :  { %390 = vrot.lane.b32.xlu1 %v388_v42, %s2715_s23 }
 0x492   :  { %v391_v44 = vpop.permute.xlu1 %390 }
 0x493   :  { %v393_v45 = vadd.f32 %v391_v44, %v383_v43 }
 0x495   :  { %2598 = vtanh.f32 %v393_v45 }
 0x49f   :  { %v2599_v52 = vpop.eup %2598 }
 0x4a0   :  { %396 = vrot.lane.b32.xlu0 %v2599_v52, %s2715_s23 }
 0x512   :  { %v397_v53 = vpop.permute.xlu0 %396 }
 0x513   :  { %v399_v54 = vmul.f32 %v2597_v40, %v397_v53 }
 0x515   :  { %401 = vrot.lane.b32.xlu1 %v399_v54, %s2716_s3 }
 0x587   :  { %v402_v61 = vpop.permute.xlu1 %401 }
 0x588   :  { %405 = vst.msk [vmem:[#allocation3 + $0x8] sm:$0xff] %vm197_vm3, %v402_v61  ;;  %2293 = vmatmul.mubr.msk.f32.vlgmr.msra.gmra.mrb[8].mxu0 %vm197_vm3, %v402_v61 }
 0x589   :  { %2495 = vmatpush3.bf16.msra.mxu0 %v2777_v4  ;;  %2314 = vmatprep.mubr.msk.f32.mxu0 %vm2713_vm2, %v2714_v8 }
 0x58a   :  { %2496 = vmatprep.subr.bf16.mxu0 %v2712_v0 }
 0x58d   :  { %2498 = vmatpush3.bf16.msra.mxu0 %v2798_v10 }
 0x58e   :  { %2505 = vmatprep.subr.bf16.mxu0 %v2712_v0 }
 0x65b   :  { %v476_v63 = vpop.f32.mrb[8].mxu0 }
 0x65c   :  { %v480_v1 = vadd.f32 %v476_v63, %v156_v62  ;;  %v2294_v2 = vpop.f32.mrb[9].mxu0 }
 0x65e   :  { %2600 = vtanh.f32 %v480_v1  ;;  %v2105_v5 = vmul.f32 -1.442695, %v480_v1 }
 0x660   :  { %2602 = vpow2.f32 %v2105_v5 }
 0x668   :  { %v2601_v3 = vpop.eup %2600 }
 0x669   :  { %490 = vrot.lane.b32.xlu0 %v2601_v3, %s2715_s23 }
 0x66a   :  { %v2603_v6 = vpop.eup %2602 }
 0x66b   :  { %v484_v7 = vadd.f32 1.0, %v2603_v6 }
 0x66d   :  { %2604 = vrcp.f32 %v484_v7 }
 0x677   :  { %v2605_v9 = vpop.eup %2604 }
 0x678   :  { %v488_v14 = vmul.f32 %v2605_v9, %v393_v45 }
 0x6db   :  { %v491_v11 = vpop.permute.xlu0 %490 }
 0x6dc   :  { %v493_v13 = vmul.f32 %v2605_v9, %v491_v11  ;;  %v1036_v11 = vld [vmem:[%s3130_s4] sm:$0xff] }
 0x6de   :  { %495 = vrot.lane.b32.xlu1 %v493_v13, %s2715_s23  ;;  %v1037_v13 = vld [vmem:[%s3130_s4 + $0x8] sm:$0xff] }
 0x750   :  { %v496_v15 = vpop.permute.xlu1 %495 }
 0x751   :  { %v498_v16 = vadd.f32 %v496_v15, %v488_v14  ;;  %v2517_v14 = vpack.c.bf16 %v1037_v13, %v1036_v11 }
 0x753   :  { %2606 = vtanh.f32 %v498_v16 }
 0x75d   :  { %v2607_v17 = vpop.eup %2606 }
 0x75e   :  { %501 = vrot.lane.b32.xlu0 %v2607_v17, %s2715_s23 }
 0x7d0   :  { %v502_v18 = vpop.permute.xlu0 %501 }
 0x7d1   :  { %v504_v19 = vmul.f32 %v2605_v9, %v502_v18  ;;  %v1038_v18 = vld [vmem:[%s3130_s4 + $0x10] sm:$0xff] }
 0x7d3   :  { %506 = vrot.lane.b32.xlu1 %v504_v19, %s2716_s3  ;;  %v1039_v19 = vld [vmem:[%s3130_s4 + $0x18] sm:$0xff] }
 0x845   :  { %v507_v20 = vpop.permute.xlu1 %506 }
 0x846   :  { %510 = vst.msk [vmem:[#allocation3 + $0x10] sm:$0xff] %vm197_vm3, %v507_v20  ;;  %2304 = vmatmul.mubr.msk.f32.vlgmr.msra.gmra.mrb[4].mxu1 %vm197_vm3, %v507_v20  ;;  %v2521_v20 = vpack.c.bf16 %v1039_v19, %v1038_v18 }
 0x847   :  { %2501 = vmatpush3.bf16.msra.mxu1 %v2777_v4  ;;  %2325 = vmatprep.mubr.msk.f32.mxu1 %vm2713_vm2, %v2714_v8 }
 0x848   :  { %2502 = vmatprep.subr.bf16.mxu1 %v2712_v0 }
 0x84b   :  { %2504 = vmatpush3.bf16.msra.mxu1 %v2798_v10 }
 0x84c   :  { %2511 = vmatprep.subr.bf16.mxu1 %v2712_v0 }
 0x919   :  { %v581_v22 = vpop.f32.mrb[4].mxu1 }
 0x91a   :  { %v585_v23 = vadd.f32 %v581_v22, %v161_v21  ;;  %v2305_v24 = vpop.f32.mrb[5].mxu1  ;;  %v1040_v22 = vld [vmem:[#allocation3] sm:$0xff] }
 0x91b   :  { %v1042_v24 = vld [vmem:[#allocation3 + $0x10] sm:$0xff] }
 0x91c   :  { %2608 = vtanh.f32 %v585_v23  ;;  %v2107_v26 = vmul.f32 -1.442695, %v585_v23  ;;  %v1041_v23 = vld [vmem:[#allocation3 + $0x8] sm:$0xff] }
 0x91e   :  { %2610 = vpow2.f32 %v2107_v26 }
 0x926   :  { %v2609_v25 = vpop.eup %2608 }
 0x927   :  { %595 = vrot.lane.b32.xlu0 %v2609_v25, %s2715_s23 }
 0x928   :  { %v2611_v27 = vpop.eup %2610 }
 0x929   :  { %v589_v28 = vadd.f32 1.0, %v2611_v27 }
 0x92b   :  { %2612 = vrcp.f32 %v589_v28  ;;  %v176_v28 = vadd.f32 %v2818_v12, %v2870_v60 }
 0x935   :  { %v2613_v29 = vpop.eup %2612 }
 0x936   :  { %v593_v32 = vmul.f32 %v2613_v29, %v498_v16 }
 0x999   :  { %v596_v30 = vpop.permute.xlu0 %595 }
 0x99a   :  { %v598_v31 = vmul.f32 %v2613_v29, %v596_v30 }
 0x99c   :  { %600 = vrot.lane.b32.xlu1 %v598_v31, %s2715_s23 }
 0xa0e   :  { %v601_v33 = vpop.permute.xlu1 %600 }
 0xa0f   :  { %v603_v34 = vadd.f32 %v601_v33, %v593_v32 }
 0xa11   :  { %2614 = vtanh.f32 %v603_v34 }
 0xa1b   :  { %v2615_v35 = vpop.eup %2614 }
 0xa1c   :  { %606 = vrot.lane.b32.xlu0 %v2615_v35, %s2715_s23 }
 0xa8e   :  { %v607_v36 = vpop.permute.xlu0 %606 }
 0xa8f   :  { %v609_v37 = vmul.f32 %v2613_v29, %v607_v36 }
 0xa91   :  { %611 = vrot.lane.b32.xlu1 %v609_v37, %s2716_s3 }
 0xb03   :  { %v612_v38 = vpop.permute.xlu1 %611 }
 0xb04   :  { %615 = vst.msk [vmem:[#allocation3 + $0x18] sm:$0xff] %vm197_vm3, %v612_v38  ;;  %2315 = vmatmul.mubr.msk.f32.vlgmr.msra.gmra.mrb[10].mxu0 %vm197_vm3, %v612_v38 }
 0xb05   :  { %2507 = vmatpush3.bf16.msra.mxu0 %v2777_v4  ;;  %2336 = vmatprep.mubr.msk.f32.mxu0 %vm2713_vm2, %v2714_v8 }
 0xb06   :  { %2508 = vmatprep.subr.bf16.mxu0 %v2712_v0 }
 0xb09   :  { %2510 = vmatpush3.bf16.msra.mxu0 %v2798_v10 }
 0xb0a   :  { %2518 = vmatprep.subr.bf16.mxu0 %v2517_v14 }
 0xb0b   :  { %v1043_v25 = vld [vmem:[#allocation3 + $0x18] sm:$0xff] }
 0xbd7   :  { %v686_v40 = vpop.f32.mrb[10].mxu0 }
 0xbd8   :  { %v690_v41 = vadd.f32 %v686_v40, %v166_v39  ;;  %v2316_v42 = vpop.f32.mrb[11].mxu0 }
 0xbda   :  { %2616 = vtanh.f32 %v690_v41  ;;  %v2109_v44 = vmul.f32 -1.442695, %v690_v41 }
 0xbdc   :  { %2618 = vpow2.f32 %v2109_v44 }
 0xbe4   :  { %v2617_v43 = vpop.eup %2616 }
 0xbe5   :  { %700 = vrot.lane.b32.xlu0 %v2617_v43, %s2715_s23 }
 0xbe6   :  { %v2619_v45 = vpop.eup %2618 }
 0xbe7   :  { %v694_v46 = vadd.f32 1.0, %v2619_v45 }
 0xbe9   :  { %2620 = vrcp.f32 %v694_v46 }
 0xbf3   :  { %v2621_v47 = vpop.eup %2620 }
 0xbf4   :  { %v698_v50 = vmul.f32 %v2621_v47, %v603_v34 }
 0xc57   :  { %v701_v48 = vpop.permute.xlu0 %700 }
 0xc58   :  { %v703_v49 = vmul.f32 %v2621_v47, %v701_v48  ;;  %v1192_v48 = vld [vmem:[%s3131_s5] sm:$0xff] }
 0xc5a   :  { %705 = vrot.lane.b32.xlu1 %v703_v49, %s2715_s23  ;;  %v1193_v49 = vld [vmem:[%s3131_s5 + $0x8] sm:$0xff] }
 0xccc   :  { %v706_v51 = vpop.permute.xlu1 %705 }
 0xccd   :  { %v708_v52 = vadd.f32 %v706_v51, %v698_v50  ;;  %v2970_v50 = vpack.c.bf16 %v1193_v49, %v1192_v48  ;;  %v1194_v51 = vld [vmem:[%s3131_s5 + $0x10] sm:$0xff] }
 0xccf   :  { %2622 = vtanh.f32 %v708_v52 }
 0xcd9   :  { %v2623_v53 = vpop.eup %2622 }
 0xcda   :  { %711 = vrot.lane.b32.xlu0 %v2623_v53, %s2715_s23 }
 0xd4c   :  { %v712_v54 = vpop.permute.xlu0 %711 }
 0xd4d   :  { %v714_v55 = vmul.f32 %v2621_v47, %v712_v54 }
 0xd4f   :  { %716 = vrot.lane.b32.xlu1 %v714_v55, %s2716_s3 }
 0xdc1   :  { %v717_v56 = vpop.permute.xlu1 %716 }
 0xdc2   :  { %720 = vst.msk [vmem:[#allocation3 + $0x20] sm:$0xff] %vm197_vm3, %v717_v56  ;;  %2326 = vmatmul.mubr.msk.f32.vlgmr.msra.gmra.mrb[6].mxu1 %vm197_vm3, %v717_v56 }
 0xdc3   :  { %2513 = vmatpush3.bf16.msra.mxu1 %v2777_v4  ;;  %2347 = vmatprep.mubr.msk.f32.mxu1 %vm2713_vm2, %v2714_v8 }
 0xdc4   :  { %2514 = vmatprep.subr.bf16.mxu1 %v2712_v0 }
 0xdc7   :  { %2516 = vmatpush3.bf16.msra.mxu1 %v2798_v10 }
 0xdc8   :  { %2525 = vmatprep.subr.bf16.mxu1 %v2712_v0 }
 0xdc9   :  { %v1044_v26 = vld [vmem:[#allocation3 + $0x20] sm:$0xff] }
 0xe95   :  { %v791_v61 = vpop.f32.mrb[6].mxu1 }
 0xe96   :  { %v795_v62 = vadd.f32 %v791_v61, %v171_v58  ;;  %v2327_v63 = vpop.f32.mrb[7].mxu1  ;;  %v181_v61 = vadd.f32 %v2868_v59, %v2818_v12 }
 0xe98   :  { %2624 = vtanh.f32 %v795_v62  ;;  %v2111_v4 = vmul.f32 -1.442695, %v795_v62 }
 0xe9a   :  { %2626 = vpow2.f32 %v2111_v4  ;;  %v3006_v4 = vld [vmem:[%s3132_s6] ss:$0 sm:$0xff] }
 0xea2   :  { %v2625_v1 = vpop.eup %2624 }
 0xea3   :  { %805 = vrot.lane.b32.xlu0 %v2625_v1, %s2715_s23 }
 0xea4   :  { %v2627_v2 = vpop.eup %2626 }
 0xea5   :  { %v799_v3 = vadd.f32 1.0, %v2627_v2 }
 0xea7   :  { %2628 = vrcp.f32 %v799_v3 }
 0xeb1   :  { %v2629_v5 = vpop.eup %2628 }
 0xeb2   :  { %v803_v7 = vmul.f32 %v2629_v5, %v708_v52  ;;  %v1195_v52 = vld [vmem:[%s3131_s5 + $0x18] sm:$0xff] }
 0xeb3   :  { %v2980_v53 = vpack.c.bf16 %v1195_v52, %v1194_v51 }
 0xf15   :  { %v806_v6 = vpop.permute.xlu0 %805 }
 0xf16   :  { %v808_v10 = vmul.f32 %v2629_v5, %v806_v6 }
 0xf18   :  { %810 = vrot.lane.b32.xlu1 %v808_v10, %s2715_s23 }
 0xf8a   :  { %v811_v9 = vpop.permute.xlu1 %810 }
 0xf8b   :  { %v813_v57 = vadd.f32 %v811_v9, %v803_v7 }
 0xf8d   :  { %2630 = vtanh.f32 %v813_v57 }
 0xf97   :  { %v2631_v15 = vpop.eup %2630 }
 0xf98   :  { %816 = vrot.lane.b32.xlu0 %v2631_v15, %s2715_s23 }
0x100a   :  { %v817_v16 = vpop.permute.xlu0 %816 }
0x100b   :  { %v819_v17 = vmul.f32 %v2629_v5, %v817_v16 }
0x100d   :  { %821 = vrot.lane.b32.xlu1 %v819_v17, %s2716_s3 }
0x107f   :  { %v822_v21 = vpop.permute.xlu1 %821 }
0x1080   :  { %825 = vst.msk [vmem:[#allocation3 + $0x28] sm:$0xff] %vm197_vm3, %v822_v21  ;;  %2337 = vmatmul.mubr.msk.f32.vlgmr.msra.gmra.mrb[12].mxu0 %vm197_vm3, %v822_v21 }
0x1081   :  { %2520 = vmatpush3.bf16.msra.mxu0 %v2517_v14  ;;  %2358 = vmatprep.mubr.msk.f32.mxu0 %vm197_vm3, %v1040_v22 }
0x1082   :  { %2522 = vmatprep.subr.bf16.mxu0 %v2521_v20 }
0x1085   :  { %2524 = vmatpush3.bf16.msra.mxu0 %v2521_v20 }
0x1086   :  { %2537 = vmatprep.subr.bf16.mxu0 %v2712_v0 }
0x1087   :  { %v1045_v27 = vld [vmem:[#allocation3 + $0x28] sm:$0xff] }
0x1088   :  { %2359 = vmatmul.mubr.msk.f32.vlgmr.msra.gmra.mrb[14].mxu0 %vm197_vm3, %v1041_v23 }
0x1089   :  { %2361 = vmatprep.mubr.msk.f32.mxu0 %vm197_vm3, %v1042_v24  ;;  %2539 = vmatpush3.bf16.msra.mxu0 %v2970_v50 }
0x108a   :  { %2540 = vmatprep.subr.bf16.mxu0 %v2712_v0 }
0x108c   :  { %2362 = vmatmul.mubr.msk.f32.gmra.mrb[16].mxu0 %vm197_vm3, %v1043_v25 }
0x108d   :  { %2364 = vmatprep.mubr.msk.f32.mxu0 %vm197_vm3, %v1044_v26  ;;  %2542 = vmatpush3.bf16.msra.mxu0 %v2980_v53 }
0x108e   :  { %2549 = vmatprep.subr.bf16.mxu0 %v2712_v0 }
0x1090   :  { %2365 = vmatmul.mubr.msk.f32.gmra.mrb[18].mxu0 %vm197_vm3, %v1045_v27 }
0x1153   :  { %v896_v29 = vpop.f32.mrb[12].mxu0 }
0x1154   :  { %v900_v30 = vadd.f32 %v896_v29, %v176_v28  ;;  %v2338_v31 = vpop.f32.mrb[13].mxu0 }
0x1156   :  { %2632 = vtanh.f32 %v900_v30  ;;  %v2113_v39 = vmul.f32 -1.442695, %v900_v30 }
0x1158   :  { %2634 = vpow2.f32 %v2113_v39 }
0x115b   :  { %v2948_v32 = vpop.f32.mrb[14].mxu0 }
0x115c   :  { %v1145_v33 = vpop.f32.mrb[15].mxu0 }
0x115d   :  { %v1146_v2 = vadd.f32 %v3006_v4, %v1145_v33 }
0x115f   :  { %v2950_v34 = vpop.f32.mrb[16].mxu0 }
0x1160   :  { %v2633_v35 = vpop.eup %2632  ;;  %v2952_v36 = vpop.f32.mrb[17].mxu0 }
0x1161   :  { %910 = vrot.lane.b32.xlu0 %v2633_v35, %s2715_s23  ;;  %v1151_v35 = vadd.f32 %v2948_v32, %v3006_v4 }
0x1162   :  { %v2635_v60 = vpop.eup %2634 }
0x1163   :  { %v2955_v37 = vpop.f32.mrb[18].mxu0  ;;  %v904_v40 = vadd.f32 1.0, %v2635_v60 }
0x1164   :  { %v2957_v38 = vpop.f32.mrb[19].mxu0 }
0x1165   :  { %2636 = vrcp.f32 %v904_v40 }
0x116f   :  { %v2637_v41 = vpop.eup %2636 }
0x1170   :  { %v908_v44 = vmul.f32 %v2637_v41, %v813_v57 }
0x11d3   :  { %v911_v42 = vpop.permute.xlu0 %910 }
0x11d4   :  { %v913_v43 = vmul.f32 %v2637_v41, %v911_v42 }
0x11d6   :  { %915 = vrot.lane.b32.xlu1 %v913_v43, %s2715_s23 }
0x1248   :  { %v916_v45 = vpop.permute.xlu1 %915 }
0x1249   :  { %v2960_v46 = vadd.f32 %v916_v45, %v908_v44 }
0x124b   :  { %2638 = vtanh.f32 %v2960_v46 }
0x1255   :  { %v2639_v47 = vpop.eup %2638 }
0x1256   :  { %921 = vrot.lane.b32.xlu0 %v2639_v47, %s2715_s23 }
0x12c8   :  { %v922_v54 = vpop.permute.xlu0 %921 }
0x12c9   :  { %v924_v55 = vmul.f32 %v2637_v41, %v922_v54 }
0x12cb   :  { %926 = vrot.lane.b32.xlu1 %v924_v55, %s2716_s3 }
0x133d   :  { %v927_v56 = vpop.permute.xlu1 %926 }
0x133e   :  { %930 = vst.msk [vmem:[#allocation3 + $0x30] sm:$0xff] %vm197_vm3, %v927_v56  ;;  %2348 = vmatmul.mubr.msk.f32.vlgmr.msra.gmra.mrb[8].mxu1 %vm197_vm3, %v927_v56 }
0x133f   :  { %2527 = vmatpush3.bf16.msra.mxu1 %v2970_v50  ;;  %2378 = vmatprep.mubr.msk.f32.mxu1 %vm2713_vm2, %v2714_v8 }
0x1340   :  { %2528 = vmatprep.subr.bf16.mxu1 %v2712_v0 }
0x1343   :  { %2530 = vmatpush3.bf16.msra.mxu1 %v2980_v53 }
0x1344   :  { %2531 = vmatprep.subr.bf16.mxu1 %v2712_v0 }
0x1345   :  { %v1046_v58 = vld [vmem:[#allocation3 + $0x30] sm:$0xff] }
0x1346   :  { %2379 = vmatmul.mubr.f32.vlgmr.msra.gmra.mrb[10].mxu1 %v2714_v8  ;;  %2367 = vmatprep.mubr.msk.f32.mxu0 %vm197_vm3, %v1046_v58 }
0x1347   :  { %2533 = vmatpush3.bf16.msra.mxu1 %v2970_v50  ;;  %2389 = vmatprep.mubr.msk.f32.mxu1 %vm2713_vm2, %v2714_v8 }
0x1348   :  { %2534 = vmatprep.subr.bf16.mxu1 %v2712_v0 }
0x134b   :  { %2536 = vmatpush3.bf16.msra.mxu1 %v2980_v53 }
0x134c   :  { %2543 = vmatprep.subr.bf16.mxu1 %v2712_v0 }
0x1411   :  { %v1001_v62 = vpop.f32.mrb[8].mxu1 }
0x1412   :  { %v1005_v63 = vadd.f32 %v1001_v62, %v181_v61  ;;  %v2349_v1 = vpop.f32.mrb[9].mxu1 }
0x1414   :  { %v2115_v18 = vmul.f32 -1.442695, %v1005_v63 }
0x1419   :  { %v1263_v3 = vpop.f32.mrb[10].mxu1 }
0x141a   :  { %v1267_v5 = vadd.f32 %v1263_v3, %v1146_v2  ;;  %v2380_v6 = vpop.f32.mrb[11].mxu1 }
0x141c   :  { %2640 = vtanh.f32 %v1267_v5  ;;  %v2125_v7 = vmul.f32 -1.442695, %v1267_v5 }
0x141e   :  { %2642 = vpow2.f32 %v2125_v7 }
0x1426   :  { %v2641_v10 = vpop.eup %2640 }
0x1427   :  { %1277 = vrot.lane.b32.xlu0 %v2641_v10, %s2715_s23 }
0x1428   :  { %v2643_v12 = vpop.eup %2642 }
0x1429   :  { %v1271_v59 = vadd.f32 1.0, %v2643_v12 }
0x142b   :  { %2644 = vrcp.f32 %v1271_v59 }
0x1435   :  { %v2645_v9 = vpop.eup %2644 }
0x1436   :  { %v1275_v13 = vmul.f32 0.0, %v2645_v9 }
0x1499   :  { %v1278_v57 = vpop.permute.xlu0 %1277 }
0x149a   :  { %v1280_v11 = vmul.f32 %v2645_v9, %v1278_v57 }
0x149c   :  { %1282 = vrot.lane.b32.xlu1 %v1280_v11, %s2715_s23 }
0x150e   :  { %v1283_v14 = vpop.permute.xlu1 %1282 }
0x150f   :  { %v1285_v15 = vadd.f32 %v1283_v14, %v1275_v13 }
0x1511   :  { %2646 = vtanh.f32 %v1285_v15 }
0x1512   :  { %2648 = vtanh.f32 %v1005_v63  ;;  %v1156_v63 = vadd.f32 %v3006_v4, %v2952_v36 }
0x1513   :  { %2650 = vpow2.f32 %v2115_v18 }
0x151b   :  { %v2647_v16 = vpop.eup %2646 }
0x151c   :  { %1288 = vrot.lane.b32.xlu0 %v2647_v16, %s2715_s23  ;;  %v2649_v17 = vpop.eup %2648 }
0x151d   :  { %v2651_v19 = vpop.eup %2650 }
0x151e   :  { %v1009_v20 = vadd.f32 1.0, %v2651_v19 }
0x1520   :  { %1015 = vrot.lane.b32.xlu0 %v2649_v17, %s2715_s23  ;;  %2652 = vrcp.f32 %v1009_v20  ;;  %v1161_v17 = vadd.f32 %v2950_v34, %v3006_v4 }
0x152a   :  { %v2653_v23 = vpop.eup %2652 }
0x152b   :  { %v1013_v27 = vmul.f32 %v2653_v23, %v2960_v46 }
0x158e   :  { %v1289_v21 = vpop.permute.xlu0 %1288 }
0x158f   :  { %v1291_v22 = vmul.f32 %v2645_v9, %v1289_v21 }
0x1591   :  { %1294 = vrot.lane.b32.xlu1 %v1291_v22, %s2716_s3 }
0x1592   :  { %v1016_v24 = vpop.permute.xlu0 %1015 }
0x1593   :  { %v1018_v25 = vmul.f32 %v2653_v23, %v1016_v24 }
0x1595   :  { %1020 = vrot.lane.b32.xlu0 %v1018_v25, %s2715_s23 }
0x1603   :  { %v1295_v26 = vpop.permute.xlu1 %1294 }
0x1604   :  { %2390 = vmatmul.mubr.msk.f32.vlgmr.msra.gmra.mrb[12].mxu1 %vm197_vm3, %v1295_v26 }
0x1605   :  { %2545 = vmatpush3.bf16.msra.mxu1 %v2970_v50  ;;  %2411 = vmatprep.mubr.msk.f32.mxu1 %vm2713_vm2, %v2714_v8 }
0x1606   :  { %2546 = vmatprep.subr.bf16.mxu1 %v2712_v0 }
0x1607   :  { %v1021_v28 = vpop.permute.xlu0 %1020 }
0x1608   :  { %v1023_v29 = vadd.f32 %v1021_v28, %v1013_v27 }
0x1609   :  { %2548 = vmatpush3.bf16.msra.mxu1 %v2980_v53 }
0x160a   :  { %2654 = vtanh.f32 %v1023_v29  ;;  %2555 = vmatprep.subr.bf16.mxu1 %v2712_v0 }
0x1614   :  { %v2655_v30 = vpop.eup %2654 }
0x1615   :  { %1026 = vrot.lane.b32.xlu0 %v2655_v30, %s2715_s23 }
0x1687   :  { %v1027_v31 = vpop.permute.xlu0 %1026 }
0x1688   :  { %v1029_v33 = vmul.f32 %v2653_v23, %v1027_v31 }
0x168a   :  { %1031 = vrot.lane.b32.xlu0 %v1029_v33, %s2716_s3 }
0x16d7   :  { %v1364_v39 = vpop.f32.mrb[12].mxu1 }
0x16d8   :  { %v1368_v60 = vadd.f32 %v1364_v39, %v1151_v35  ;;  %v2391_v40 = vpop.f32.mrb[13].mxu1  ;;  %v1166_v39 = vadd.f32 %v3006_v4, %v2957_v38 }
0x16da   :  { %2656 = vtanh.f32 %v1368_v60  ;;  %v2127_v44 = vmul.f32 -1.442695, %v1368_v60 }
0x16dc   :  { %2658 = vpow2.f32 %v2127_v44 }
0x16e4   :  { %v2657_v41 = vpop.eup %2656 }
0x16e5   :  { %1378 = vrot.lane.b32.xlu1 %v2657_v41, %s2715_s23 }
0x16e6   :  { %v2659_v45 = vpop.eup %2658 }
0x16e7   :  { %v1372_v32 = vadd.f32 1.0, %v2659_v45 }
0x16e9   :  { %2660 = vrcp.f32 %v1372_v32 }
0x16f3   :  { %v2661_v46 = vpop.eup %2660 }
0x16f4   :  { %v1376_v49 = vmul.f32 %v2661_v46, %v1285_v15 }
0x16fc   :  { %v1032_v42 = vpop.permute.xlu0 %1031 }
0x16fd   :  { %1035 = vst.msk [vmem:[#allocation3 + $0x38] sm:$0xff] %vm197_vm3, %v1032_v42 }
0x1704   :  { %v1047_v43 = vld [vmem:[#allocation3 + $0x38] sm:$0xff] }
0x1705   :  { %2368 = vmatmul.mubr.msk.f32.gmra.mrb[20].mxu0 %vm197_vm3, %v1047_v43 }
0x1706   :  { %2400 = vmatprep.mubr.msk.f32.mxu0 %vm2713_vm2, %v2714_v8 }
0x1757   :  { %v1379_v47 = vpop.permute.xlu1 %1378 }
0x1758   :  { %v1381_v48 = vmul.f32 %v2661_v46, %v1379_v47 }
0x175a   :  { %1383 = vrot.lane.b32.xlu1 %v1381_v48, %s2715_s23 }
0x17cc   :  { %v1384_v51 = vpop.permute.xlu1 %1383 }
0x17cd   :  { %v1386_v52 = vadd.f32 %v1384_v51, %v1376_v49 }
0x17cf   :  { %2662 = vtanh.f32 %v1386_v52 }
0x17d8   :  { %v3033_v54 = vpop.f32.mrb[20].mxu0 }
0x17d9   :  { %v2663_v55 = vpop.eup %2662  ;;  %v3035_v56 = vpop.f32.mrb[21].mxu0 }
0x17da   :  { %1389 = vrot.lane.b32.xlu1 %v2663_v55, %s2715_s23 }
0x184c   :  { %v1390_v58 = vpop.permute.xlu1 %1389 }
0x184d   :  { %v1392_v61 = vmul.f32 %v2661_v46, %v1390_v58 }
0x184f   :  { %1395 = vrot.lane.b32.xlu1 %v1392_v61, %s2716_s3  ;;  %v1171_v61 = vadd.f32 %v2955_v37, %v3006_v4 }
0x18c1   :  { %v1396_v62 = vpop.permute.xlu1 %1395 }
0x18c2   :  { %2401 = vmatmul.mubr.msk.f32.vlgmr.msra.gmra.mrb[22].mxu0 %vm197_vm3, %v1396_v62 }
0x18c3   :  { %2551 = vmatpush3.bf16.msra.mxu0 %v2970_v50  ;;  %2422 = vmatprep.mubr.msk.f32.mxu0 %vm2713_vm2, %v2714_v8 }
0x18c4   :  { %2552 = vmatprep.subr.bf16.mxu0 %v2712_v0 }
0x18c7   :  { %2554 = vmatpush3.bf16.msra.mxu0 %v2980_v53 }
0x18c8   :  { %2561 = vmatprep.subr.bf16.mxu0 %v2712_v0 }
0x1995   :  { %v1465_v1 = vpop.f32.mrb[22].mxu0 }
0x1996   :  { %v1469_v2 = vadd.f32 %v1465_v1, %v1156_v63  ;;  %v2402_v3 = vpop.f32.mrb[23].mxu0 }
0x1998   :  { %2664 = vtanh.f32 %v1469_v2  ;;  %v2129_v6 = vmul.f32 -1.442695, %v1469_v2 }
0x199a   :  { %2666 = vpow2.f32 %v2129_v6 }
0x19a2   :  { %v2665_v5 = vpop.eup %2664 }
0x19a3   :  { %1479 = vrot.lane.b32.xlu0 %v2665_v5, %s2715_s23 }
0x19a4   :  { %v2667_v10 = vpop.eup %2666 }
0x19a5   :  { %v1473_v7 = vadd.f32 1.0, %v2667_v10 }
0x19a7   :  { %2668 = vrcp.f32 %v1473_v7 }
0x19b1   :  { %v2669_v12 = vpop.eup %2668 }
0x19b2   :  { %v1477_v57 = vmul.f32 %v2669_v12, %v1386_v52 }
0x1a15   :  { %v1480_v59 = vpop.permute.xlu0 %1479 }
0x1a16   :  { %v1482_v9 = vmul.f32 %v2669_v12, %v1480_v59 }
0x1a18   :  { %1484 = vrot.lane.b32.xlu1 %v1482_v9, %s2715_s23 }
0x1a8a   :  { %v1485_v11 = vpop.permute.xlu1 %1484 }
0x1a8b   :  { %v1487_v36 = vadd.f32 %v1485_v11, %v1477_v57 }
0x1a8d   :  { %2670 = vtanh.f32 %v1487_v36 }
0x1a97   :  { %v2671_v13 = vpop.eup %2670 }
0x1a98   :  { %1490 = vrot.lane.b32.xlu0 %v2671_v13, %s2715_s23 }
0x1b0a   :  { %v1491_v14 = vpop.permute.xlu0 %1490 }
0x1b0b   :  { %v1493_v15 = vmul.f32 %v2669_v12, %v1491_v14 }
0x1b0d   :  { %1496 = vrot.lane.b32.xlu1 %v1493_v15, %s2716_s3 }
0x1b7f   :  { %v1497_v16 = vpop.permute.xlu1 %1496 }
0x1b80   :  { %2412 = vmatmul.mubr.msk.f32.vlgmr.msra.gmra.mrb[14].mxu1 %vm197_vm3, %v1497_v16 }
0x1b81   :  { %2557 = vmatpush3.bf16.msra.mxu1 %v2970_v50  ;;  %2433 = vmatprep.mubr.msk.f32.mxu1 %vm2713_vm2, %v2714_v8 }
0x1b82   :  { %2558 = vmatprep.subr.bf16.mxu1 %v2712_v0 }
0x1b85   :  { %2560 = vmatpush3.bf16.msra.mxu1 %v2980_v53 }
0x1b86   :  { %2567 = vmatprep.subr.bf16.mxu1 %v2712_v0 }
0x1c53   :  { %v1566_v18 = vpop.f32.mrb[14].mxu1 }
0x1c54   :  { %v1570_v19 = vadd.f32 %v1566_v18, %v1161_v17  ;;  %v2413_v20 = vpop.f32.mrb[15].mxu1 }
0x1c56   :  { %2672 = vtanh.f32 %v1570_v19  ;;  %v2131_v22 = vmul.f32 -1.442695, %v1570_v19 }
0x1c58   :  { %2674 = vpow2.f32 %v2131_v22 }
0x1c60   :  { %v2673_v21 = vpop.eup %2672 }
0x1c61   :  { %1580 = vrot.lane.b32.xlu0 %v2673_v21, %s2715_s23 }
0x1c62   :  { %v2675_v23 = vpop.eup %2674 }
0x1c63   :  { %v1574_v24 = vadd.f32 1.0, %v2675_v23 }
0x1c65   :  { %2676 = vrcp.f32 %v1574_v24 }
0x1c6f   :  { %v2677_v25 = vpop.eup %2676 }
0x1c70   :  { %v1578_v28 = vmul.f32 %v2677_v25, %v1487_v36  ;;  %v1176_v36 = vadd.f32 %v3006_v4, %v3035_v56 }
0x1cd3   :  { %v1581_v26 = vpop.permute.xlu0 %1580 }
0x1cd4   :  { %v1583_v27 = vmul.f32 %v2677_v25, %v1581_v26 }
0x1cd6   :  { %1585 = vrot.lane.b32.xlu1 %v1583_v27, %s2715_s23 }
0x1d48   :  { %v1586_v29 = vpop.permute.xlu1 %1585 }
0x1d49   :  { %v1588_v34 = vadd.f32 %v1586_v29, %v1578_v28  ;;  %v1181_v28 = vadd.f32 %v3033_v54, %v3006_v4  ;;  %v1999_v54 = vld [vmem:[%s3133_s7] sm:$0xff] }
0x1d4b   :  { %2678 = vtanh.f32 %v1588_v34 }
0x1d55   :  { %v2679_v30 = vpop.eup %2678 }
0x1d56   :  { %1591 = vrot.lane.b32.xlu0 %v2679_v30, %s2715_s23 }
0x1dc8   :  { %v1592_v31 = vpop.permute.xlu0 %1591 }
0x1dc9   :  { %v1594_v33 = vmul.f32 %v2677_v25, %v1592_v31 }
0x1dcb   :  { %1597 = vrot.lane.b32.xlu1 %v1594_v33, %s2716_s3 }
0x1e3d   :  { %v1598_v35 = vpop.permute.xlu1 %1597 }
0x1e3e   :  { %2423 = vmatmul.mubr.msk.f32.vlgmr.msra.gmra.mrb[24].mxu0 %vm197_vm3, %v1598_v35 }
0x1e3f   :  { %2563 = vmatpush3.bf16.msra.mxu0 %v2970_v50  ;;  %2444 = vmatprep.mubr.msk.f32.mxu0 %vm2713_vm2, %v2714_v8 }
0x1e40   :  { %2564 = vmatprep.subr.bf16.mxu0 %v2712_v0 }
0x1e43   :  { %2566 = vmatpush3.bf16.msra.mxu0 %v2980_v53 }
0x1e44   :  { %2573 = vmatprep.subr.bf16.mxu0 %v2712_v0 }
0x1f11   :  { %v1667_v60 = vpop.f32.mrb[24].mxu0 }
0x1f12   :  { %v1671_v40 = vadd.f32 %v1667_v60, %v1166_v39  ;;  %v2424_v41 = vpop.f32.mrb[25].mxu0 }
0x1f14   :  { %2680 = vtanh.f32 %v1671_v40  ;;  %v2133_v43 = vmul.f32 -1.442695, %v1671_v40 }
0x1f16   :  { %2682 = vpow2.f32 %v2133_v43 }
0x1f1e   :  { %v2681_v42 = vpop.eup %2680 }
0x1f1f   :  { %1681 = vrot.lane.b32.xlu0 %v2681_v42, %s2715_s23 }
0x1f20   :  { %v2683_v44 = vpop.eup %2682 }
0x1f21   :  { %v1675_v45 = vadd.f32 1.0, %v2683_v44  ;;  %v2000_v44 = vld [vmem:[%s3133_s7 + $0x8] sm:$0xff] }
0x1f23   :  { %2684 = vrcp.f32 %v1675_v45  ;;  %v2001_v45 = vld [vmem:[%s3133_s7 + $0x10] sm:$0xff] }
0x1f2d   :  { %v2685_v32 = vpop.eup %2684 }
0x1f2e   :  { %v1679_v48 = vmul.f32 %v2685_v32, %v1588_v34 }
0x1f91   :  { %v1682_v46 = vpop.permute.xlu0 %1681 }
0x1f92   :  { %v1684_v47 = vmul.f32 %v2685_v32, %v1682_v46  ;;  %v2002_v46 = vld [vmem:[%s3133_s7 + $0x18] sm:$0xff] }
0x1f94   :  { %1686 = vrot.lane.b32.xlu1 %v1684_v47, %s2715_s23  ;;  %v2577_v47 = vpack.c.bf16 %v2002_v46, %v2001_v45 }
0x2006   :  { %v1687_v49 = vpop.permute.xlu1 %1686 }
0x2007   :  { %v1689_v38 = vadd.f32 %v1687_v49, %v1679_v48  ;;  %v14_v49 = vstv %s3134_s8 }
0x2008   :  { %15 = vst [vmem:[#allocation4] sm:$0x1] %v14_v49 }
0x2009   :  { %2686 = vtanh.f32 %v1689_v38 }
0x2013   :  { %v2687_v51 = vpop.eup %2686 }
0x2014   :  { %1692 = vrot.lane.b32.xlu0 %v2687_v51, %s2715_s23 }
0x2086   :  { %v1693_v52 = vpop.permute.xlu0 %1692 }
0x2087   :  { %v1695_v55 = vmul.f32 %v2685_v32, %v1693_v52  ;;  %v2574_v32 = vpack.c.bf16 %v2000_v44, %v1999_v54 }
0x2089   :  { %1698 = vrot.lane.b32.xlu1 %v1695_v55, %s2716_s3  ;;  %v2140_v55 = vld [vmem:[#allocation4] ss:$0 sm:$0xff] }
0x20fb   :  { %v1699_v58 = vpop.permute.xlu1 %1698 }
0x20fc   :  { %2434 = vmatmul.mubr.msk.f32.vlgmr.msra.gmra.mrb[16].mxu1 %vm197_vm3, %v1699_v58 }
0x20fd   :  { %2569 = vmatpush3.bf16.msra.mxu1 %v2970_v50  ;;  %2455 = vmatprep.mubr.msk.f32.mxu1 %vm2713_vm2, %v2714_v8 }
0x20fe   :  { %2570 = vmatprep.subr.bf16.mxu1 %v2712_v0 }
0x2101   :  { %2572 = vmatpush3.bf16.msra.mxu1 %v2980_v53 }
0x21cf   :  { %v1768_v62 = vpop.f32.mrb[16].mxu1 }
0x21d0   :  { %v1772_v63 = vadd.f32 %v1768_v62, %v1171_v61  ;;  %v2435_v1 = vpop.f32.mrb[17].mxu1 }
0x21d2   :  { %2688 = vtanh.f32 %v1772_v63  ;;  %v2135_v3 = vmul.f32 -1.442695, %v1772_v63 }
0x21d4   :  { %2690 = vpow2.f32 %v2135_v3 }
0x21dc   :  { %v2689_v2 = vpop.eup %2688 }
0x21dd   :  { %1782 = vrot.lane.b32.xlu0 %v2689_v2, %s2715_s23 }
0x21de   :  { %v2691_v50 = vpop.eup %2690 }
0x21df   :  { %v1776_v5 = vadd.f32 1.0, %v2691_v50 }
0x21e1   :  { %2692 = vrcp.f32 %v1776_v5 }
0x21eb   :  { %v2693_v6 = vpop.eup %2692 }
0x21ec   :  { %v1780_v53 = vmul.f32 %v2693_v6, %v1689_v38 }
0x224f   :  { %v1783_v10 = vpop.permute.xlu0 %1782 }
0x2250   :  { %v1785_v7 = vmul.f32 %v2693_v6, %v1783_v10 }
0x2252   :  { %1787 = vrot.lane.b32.xlu1 %v1785_v7, %s2715_s23 }
0x22c4   :  { %v1788_v12 = vpop.permute.xlu1 %1787 }
0x22c5   :  { %v1790_v37 = vadd.f32 %v1788_v12, %v1780_v53 }
0x22c7   :  { %2694 = vtanh.f32 %v1790_v37 }
0x22d1   :  { %v2695_v59 = vpop.eup %2694 }
0x22d2   :  { %1793 = vrot.lane.b32.xlu0 %v2695_v59, %s2715_s23 }
0x2344   :  { %v1794_v9 = vpop.permute.xlu0 %1793 }
0x2345   :  { %v1796_v57 = vmul.f32 %v2693_v6, %v1794_v9 }
0x2347   :  { %1799 = vrot.lane.b32.xlu1 %v1796_v57, %s2716_s3 }
0x23b9   :  { %v1800_v11 = vpop.permute.xlu1 %1799 }
0x23ba   :  { %2445 = vmatmul.mubr.msk.f32.vlgmr.msra.gmra.mrb[26].mxu0 %vm197_vm3, %v1800_v11 }
0x23bb   :  { %2466 = vmatprep.mubr.msk.f32.mxu0 %vm2713_vm2, %v2714_v8  ;;  %2575 = vmatpush3.bf16.msra.mxu0 %v2574_v32 }
0x23bc   :  { %2576 = vmatprep.subr.bf16.mxu0 %v2712_v0 }
0x23bf   :  { %2578 = vmatpush3.bf16.msra.mxu0 %v2577_v47 }
0x248d   :  { %v1869_v13 = vpop.f32.mrb[26].mxu0 }
0x248e   :  { %v1873_v14 = vadd.f32 %v1869_v13, %v1176_v36  ;;  %v2446_v15 = vpop.f32.mrb[27].mxu0 }
0x2490   :  { %2696 = vtanh.f32 %v1873_v14  ;;  %v2137_v17 = vmul.f32 -1.442695, %v1873_v14 }
0x2492   :  { %2698 = vpow2.f32 %v2137_v17 }
0x249a   :  { %v2697_v16 = vpop.eup %2696 }
0x249b   :  { %1883 = vrot.lane.b32.xlu0 %v2697_v16, %s2715_s23 }
0x249c   :  { %v2699_v18 = vpop.eup %2698 }
0x249d   :  { %v1877_v19 = vadd.f32 1.0, %v2699_v18 }
0x249f   :  { %2700 = vrcp.f32 %v1877_v19 }
0x24a9   :  { %v2701_v20 = vpop.eup %2700 }
0x24aa   :  { %v1881_v8 = vmul.f32 %v2701_v20, %v1790_v37 }
0x250d   :  { %v1884_v21 = vpop.permute.xlu0 %1883 }
0x250e   :  { %v1886_v22 = vmul.f32 %v2701_v20, %v1884_v21 }
0x2510   :  { %1888 = vrot.lane.b32.xlu1 %v1886_v22, %s2715_s23 }
0x2582   :  { %v1889_v23 = vpop.permute.xlu1 %1888 }
0x2583   :  { %v1891_v56 = vadd.f32 %v1889_v23, %v1881_v8 }
0x2585   :  { %2702 = vtanh.f32 %v1891_v56 }
0x258f   :  { %v2703_v24 = vpop.eup %2702 }
0x2590   :  { %1894 = vrot.lane.b32.xlu0 %v2703_v24, %s2715_s23 }
0x2602   :  { %v1895_v25 = vpop.permute.xlu0 %1894 }
0x2603   :  { %v1897_v26 = vmul.f32 %v2701_v20, %v1895_v25 }
0x2605   :  { %1900 = vrot.lane.b32.xlu1 %v1897_v26, %s2716_s3 }
0x2677   :  { %v1901_v27 = vpop.permute.xlu1 %1900 }
0x2678   :  { %2456 = vmatmul.mubr.msk.f32.vlgmr.msra.gmra.mrb[18].mxu1 %vm197_vm3, %v1901_v27 }
0x274b   :  { %v1970_v29 = vpop.f32.mrb[18].mxu1 }
0x274c   :  { %v1974_v34 = vadd.f32 %v1970_v29, %v1181_v28  ;;  %v2457_v30 = vpop.f32.mrb[19].mxu1 }
0x274e   :  { %2704 = vtanh.f32 %v1974_v34  ;;  %v2139_v33 = vmul.f32 -1.442695, %v1974_v34 }
0x2750   :  { %2706 = vpow2.f32 %v2139_v33 }
0x2758   :  { %v2705_v31 = vpop.eup %2704 }
0x2759   :  { %1984 = vrot.lane.b32.xlu0 %v2705_v31, %s2715_s23 }
0x275a   :  { %v2707_v35 = vpop.eup %2706 }
0x275b   :  { %v1978_v39 = vadd.f32 1.0, %v2707_v35 }
0x275d   :  { %2708 = vrcp.f32 %v1978_v39 }
0x2767   :  { %v2709_v60 = vpop.eup %2708 }
0x2768   :  { %v1982_v42 = vmul.f32 %v2709_v60, %v1891_v56 }
0x27cb   :  { %v1985_v40 = vpop.permute.xlu0 %1984 }
0x27cc   :  { %v1987_v41 = vmul.f32 %v2709_v60, %v1985_v40 }
0x27ce   :  { %1989 = vrot.lane.b32.xlu1 %v1987_v41, %s2715_s23 }
0x2840   :  { %v1990_v43 = vpop.permute.xlu1 %1989 }
0x2841   :  { %v1992_v4 = vadd.f32 %v1990_v43, %v1982_v42 }
0x2843   :  { %2710 = vtanh.f32 %v1992_v4 }
0x284d   :  { %v2711_v48 = vpop.eup %2710 }
0x284e   :  { %1995 = vrot.lane.b32.xlu0 %v2711_v48, %s2715_s23 }
0x28c0   :  { %v1996_v38 = vpop.permute.xlu0 %1995 }
0x28c1   :  { %v1998_v51 = vmul.f32 %v2709_v60, %v1996_v38 }
0x28c3   :  { %2011 = vrot.lane.b32.xlu1 %v1998_v51, %s2716_s3 }
0x2935   :  { %v2012_v52 = vpop.permute.xlu1 %2011 }
0x2936   :  { %2467 = vmatmul.mubr.msk.f32.vlgmr.msra.gmra.mrb[28].mxu0 %vm197_vm3, %v2012_v52 }
0x2a09   :  { %v2081_v58 = vpop.f32.mrb[28].mxu0 }
0x2a0a   :  { %v2082_v0 = vadd.f32 %v2140_v55, %v2081_v58  ;;  %v2468_v61 = vpop.f32.mrb[29].mxu0 }
0x2a0c   :  { %2086 = vst.msk [vmem:[%s3135_s9] sm:$0xff] %vm2085_vm4, %v2082_v0 }

</bundles_post_ra>
